<compile_context>
chip_gen: v5e
topology: v5e:2x2
jax: 0.10.0
libtpu: 0.0.40
codegen_flags: <defaults>
</compile_context>

<pallas_src>
from functools import partial

import jax
import jax.numpy as jnp
from jax.experimental import pallas as pl
from jax.experimental.pallas import tpu as pltpu

F32 = jnp.float32
BF16 = jnp.bfloat16
BN_EPS = 1e-5
LANE = 128            # channel padding unit == matmul N tile (lane width)


def _round_up(x, m):
    return (x + m - 1) // m * m


# ----------------------------- Pallas conv kernel -----------------------------
#
#   out = relu_opt( conv(x, w_bn) + shift [+ residual] )
#
#   x block   : (1, 1, Wpad, Cp)   one padded input row  (row = ho*stride + di)
#   w block   : (1, KW, Cp, tCo)   all KW column taps of tap-row di (BN-folded)
#   shift     : (1, tCo)           folded-BN bias
#   res block : (1, 1, Wo, tCo)    optional residual (bf16)
#   out block : (1, 1, Wo, tCo)    one output row, accumulated across tap rows
#   scratch   : (Wo, tCo) f32 accumulator

def _conv_bn_kernel(*refs, col_starts, wo, relu, has_res):
    if has_res:
        x_ref, w_ref, shift_ref, res_ref, o_ref, acc_ref = refs
    else:
        x_ref, w_ref, shift_ref, o_ref, acc_ref = refs
        res_ref = None

    t = pl.program_id(3)                         # tap-row index (reduction axis)

    @pl.when(t == 0)
    def _init():
        acc_ref[...] = jnp.zeros_like(acc_ref)

    part = None
    for dj, cs in enumerate(col_starts):         # static loop over column taps
        lhs = x_ref[0, 0, cs:cs + wo, :]         # (Wo, Cp) bf16, contiguous
        d = jnp.dot(lhs, w_ref[0, dj], preferred_element_type=jnp.float32)
        part = d if part is None else part + d
    acc_ref[...] += part

    @pl.when(t == pl.num_programs(3) - 1)
    def _finalize():
        out = acc_ref[...] + shift_ref[...]      # BN (scale folded into w) bias
        if has_res:
            out = out + res_ref[0, 0].astype(jnp.float32)
        if relu:
            out = jnp.maximum(out, 0.0)
        o_ref[0, 0] = out.astype(o_ref.dtype)


def conv_bn(x, w, scale, shift, *, stride=1, padding=1, relu=True, residual=None):
    """Fused Conv2d (bias=False) + inference-mode BN + optional residual + ReLU.

    x        : (N, H, W, Cp)  bf16, channels zero-padded to Cp = round_up(Cin,128)
    w        : (KH, KW, Cin, Cout) f32
    scale,shift : folded BN affine, shape (Cout,)
    residual : optional (N, Ho, Wo, Cop) bf16
    returns  : (N, Ho, Wo, Cop) bf16 with Cop = round_up(Cout, 128)
    """
    n, h, wdt, cp = x.shape
    kh, kw, cin, cout = w.shape
    assert cp == _round_up(cin, LANE), (cp, cin)
    cop = _round_up(cout, LANE)
    tco = LANE                      # N tile: divides cop exactly -> no dead MXU work

    # Fold BN scale into the weights, zero-pad channels, cast MXU operands to bf16.
    wf = (w.astype(F32) * scale.astype(F32)[None, None, None, :])
    wf = jnp.pad(wf, ((0, 0), (0, 0), (0, cp - cin), (0, cop - cout))).astype(BF16)
    bias = jnp.pad(shift.astype(F32), (0, cop - cout)).reshape(1, cop)

    # Spatial zero-pad (the conv's own padding).  For stride>1 group the columns
    # by phase (col % stride) so every column tap is a contiguous static slice.
    xp = jnp.pad(x, ((0, 0), (padding, padding), (padding, padding), (0, 0)))
    hp, wp = h + 2 * padding, wdt + 2 * padding
    ho = (hp - kh) // stride + 1
    wo = (wp - kw) // stride + 1
    if stride == 1:
        col_starts = tuple(range(kw))
    else:
        parts = [xp[:, :, p::stride, :] for p in range(stride)]
        counts = [int(pt.shape[2]) for pt in parts]
        offs = [0]
        for c in counts[:-1]:
            offs.append(offs[-1] + c)
        xp = jnp.concatenate(parts, axis=2)
        col_starts = tuple(offs[dj % stride] + dj // stride for dj in range(kw))
    wpp = int(xp.shape[2])

    in_specs = [
        # one padded input row; H block size 1 -> block index == element row index
        pl.BlockSpec((1, 1, wpp, cp),
                     lambda nn, hh, co, t: (nn, hh * stride + t, 0, 0)),
        # all KW column taps of tap-row t
        pl.BlockSpec((1, kw, cp, tco), lambda nn, hh, co, t: (t, 0, 0, co)),
        # folded-BN bias
        pl.BlockSpec((1, tco), lambda nn, hh, co, t: (0, co)),
    ]
    args = [xp, wf, bias]
    if residual is not None:
        assert residual.shape == (n, ho, wo, cop), (residual.shape, (n, ho, wo, cop))
        in_specs.append(pl.BlockSpec((1, 1, wo, tco),
                                     lambda nn, hh, co, t: (nn, hh, 0, co)))
        args.append(residual)

    grid = (n, ho, cop // tco, kh)               # reduction (tap rows) last

    # VMEM limit from the actual double-buffered footprint (cap < v7x 64 MiB).
    res_blk = wo * tco * 2 if residual is not None else 0
    foot = 2 * (wpp * cp * 2 + kw * cp * tco * 2 + tco * 4 + wo * tco * 2 + res_blk) \
        + wo * tco * 4
    vmem_limit = int(min(48 * 2**20, max(16 * 2**20, 8 * foot)))

    out = pl.pallas_call(
        partial(_conv_bn_kernel, col_starts=col_starts, wo=wo, relu=relu,
                has_res=residual is not None),
        out_shape=jax.ShapeDtypeStruct((n, ho, wo, cop), BF16),
        grid=grid,
        in_specs=in_specs,
        out_specs=pl.BlockSpec((1, 1, wo, tco), lambda nn, hh, co, t: (nn, hh, 0, co)),
        scratch_shapes=[pltpu.VMEM((wo, tco), jnp.float32)],
        compiler_params=pltpu.CompilerParams(
            dimension_semantics=("parallel", "parallel", "parallel", "arbitrary"),
            vmem_limit_bytes=vmem_limit),
    )(*args)
    return out


# ----------------------------- parameter creation -----------------------------

class KeyGen:
    def __init__(self, seed):
        self._key = jax.random.PRNGKey(seed)

    def __call__(self):
        self._key, k = jax.random.split(self._key)
        return k


def init_conv(kg, kh, kw, cin, cout):
    fan_in = kh * kw * cin
    return (jax.random.normal(kg(), (kh, kw, cin, cout), F32)
            / jnp.sqrt(jnp.float32(fan_in)))


def init_bn(kg, c):
    # affine_par=True -> gamma/beta exist.  BN is frozen in the original DeepLab
    # code, so inference-mode folding with running statistics matches deployment.
    gamma = 1.0 + 0.1 * jax.random.normal(kg(), (c,), F32)
    beta = 0.1 * jax.random.normal(kg(), (c,), F32)
    mean = 0.1 * jax.random.normal(kg(), (c,), F32)
    var = 1.0 + 0.1 * jax.random.uniform(kg(), (c,), F32)
    scale = gamma / jnp.sqrt(var + BN_EPS)
    shift = beta - mean * scale
    return scale, shift


def init_basic_block(kg, inplanes, planes, stride=1, downsample=False):
    p = {'stride': stride}
    p['conv1_w'] = init_conv(kg, 3, 3, inplanes, planes)     # conv3x3, stride
    p['bn1'] = init_bn(kg, planes)
    p['conv2_w'] = init_conv(kg, 3, 3, planes, planes)       # conv3x3, stride 1
    p['bn2'] = init_bn(kg, planes)
    if downsample:       # standard ResNet downsample: 1x1 conv (stride) + BN
        p['ds_w'] = init_conv(kg, 1, 1, inplanes, planes)
        p['ds_bn'] = init_bn(kg, planes)
    return p


# -------------------------------- forward pass --------------------------------

def basic_block_fwd_nhwc(p, x):
    """BasicBlock.forward on bf16, channel-padded NHWC activations."""
    out = conv_bn(x, p['conv1_w'], *p['bn1'],
                  stride=p['stride'], padding=1, relu=True)          # conv1+bn1+relu
    if 'ds_w' in p:
        residual = conv_bn(x, p['ds_w'], *p['ds_bn'],
                           stride=p['stride'], padding=0, relu=False)
    else:
        residual = x
    # conv2 + bn2 + residual add + final ReLU fused in one kernel epilogue
    out = conv_bn(out, p['conv2_w'], *p['bn2'],
                  stride=1, padding=1, relu=True, residual=residual)
    return out


def basic_block_forward(p, x_nchw):
    """Matches BasicBlock.forward; input/output are NCHW like the PyTorch module."""
    n, c, h, w = x_nchw.shape
    cp = _round_up(c, LANE)
    x = jnp.transpose(x_nchw, (0, 2, 3, 1))                          # NCHW -> NHWC
    x = jnp.pad(x, ((0, 0), (0, 0), (0, 0), (0, cp - c))).astype(BF16)
    y = basic_block_fwd_nhwc(p, x)
    planes = p['conv2_w'].shape[-1]
    y = y[..., :planes].astype(F32)                                  # unpad at block boundary
    return jnp.transpose(y, (0, 3, 1, 2))                            # NHWC -> NCHW


# --------------------------- pure-JAX f32 reference ----------------------------

def _conv_bn_ref(x, w, scale, shift, *, stride, padding, relu, residual=None):
    y = jax.lax.conv_general_dilated(
        x, w, window_strides=(stride, stride),
        padding=[(padding, padding), (padding, padding)],
        dimension_numbers=('NHWC', 'HWIO', 'NHWC'))
    y = y * scale + shift
    if residual is not None:
        y = y + residual
    return jnp.maximum(y, 0.0) if relu else y


def basic_block_ref(p, x_nchw):
    x = jnp.transpose(x_nchw, (0, 2, 3, 1)).astype(F32)
    out = _conv_bn_ref(x, p['conv1_w'], *p['bn1'],
                       stride=p['stride'], padding=1, relu=True)
    if 'ds_w' in p:
        residual = _conv_bn_ref(x, p['ds_w'], *p['ds_bn'],
                                stride=p['stride'], padding=0, relu=False)
    else:
        residual = x
    out = _conv_bn_ref(out, p['conv2_w'], *p['bn2'],
                       stride=1, padding=1, relu=True, residual=residual)
    return jnp.transpose(out, (0, 3, 1, 2))


# ------------------------------------ main -------------------------------------

if __name__ == "__main__":
    kg = KeyGen(0)
    inplanes = 32

    # block A: identity residual (stride=1, downsample=None)
    block_a = init_basic_block(kg, inplanes, inplanes, stride=1, downsample=False)
    # block B: strided block with downsample residual (1x1 conv + BN)
    block_b = init_basic_block(kg, inplanes, 2 * inplanes, stride=2, downsample=True)

    x = jax.random.normal(jax.random.PRNGKey(0), (2, inplanes, 16, 16), F32)  # NCHW

    @jax.jit
    def run(xx):
        ya = basic_block_forward(block_a, xx)
        yb = basic_block_forward(block_b, ya)
        return ya, yb

    y_a, y_b = jax.block_until_ready(run(x))

    # reference in f32 (same inference-mode BN folding)
    ya_ref = basic_block_ref(block_a, x)
    yb_ref = basic_block_ref(block_b, ya_ref)

    assert y_a.shape == (2, inplanes, 16, 16), y_a.shape
    assert y_b.shape == (2, 2 * inplanes, 8, 8), y_b.shape
    assert bool(jnp.isfinite(y_a).all()) and bool(jnp.isfinite(y_b).all())
    assert bool((y_a >= 0.0).all()) and bool((y_b >= 0.0).all())     # final ReLU
    err_a = float(jnp.max(jnp.abs(y_a - ya_ref)))
    err_b = float(jnp.max(jnp.abs(y_b - yb_ref)))
    assert err_a < 0.25 and err_b < 0.25, (err_a, err_b)             # bf16-matmul tolerance
    print("KERNEL_OK")
</pallas_src>

<mosaic_0001>
module attributes {stable_mosaic.version = 11 : i64} {
  func.func @_conv_bn_kernel(%arg0: i32, %arg1: i32, %arg2: i32, %arg3: i32, %arg4: memref<1x1x18x128xbf16, #tpu.memory_space<vmem>>, %arg5: memref<1x3x128x128xbf16, #tpu.memory_space<vmem>>, %arg6: memref<1x128xf32, #tpu.memory_space<vmem>>, %arg7: memref<1x1x16x128xbf16, #tpu.memory_space<vmem>>, %arg8: memref<16x128xf32, #tpu.memory_space<vmem>>) attributes {dimension_semantics = [#tpu.dimension_semantics<parallel>, #tpu.dimension_semantics<parallel>, #tpu.dimension_semantics<parallel>, #tpu.dimension_semantics<arbitrary>], iteration_bounds = array<i64: 2, 16, 1, 3>, scalar_prefetch = 0 : i64, scratch_operands = 1 : i64, tpu.core_type = #tpu.core_type<tc>, window_params = [{transform_indices = @transform_0, window_bounds = array<i64: 1, 1, 18, 128>}, {transform_indices = @transform_1, window_bounds = array<i64: 1, 3, 128, 128>}, {transform_indices = @transform_2, window_bounds = array<i64: 1, 128>}, {transform_indices = @transform_3, window_bounds = array<i64: 1, 1, 16, 128>}]} {
    %c0_i32 = arith.constant 0 : i32
    %0 = arith.cmpi eq, %arg3, %c0_i32 : i32
    %1 = arith.extui %0 : i1 to i32
    %c0_i32_0 = arith.constant 0 : i32
    %2 = arith.cmpi ne, %1, %c0_i32_0 : i32
    scf.if %2 {
      %cst_29 = arith.constant 0.000000e+00 : f32
      %26 = vector.broadcast %cst_29 : f32 to vector<16x128xf32>
      %c0_30 = arith.constant 0 : index
      %c0_31 = arith.constant 0 : index
      %27 = vector.load %arg8[%c0_30, %c0_31] : memref<16x128xf32, #tpu.memory_space<vmem>>, vector<16x128xf32>
      tpu.vector_store %arg8[%c0_30, %c0_31], %26 {strides = array<i32>} : memref<16x128xf32, #tpu.memory_space<vmem>>, vector<16x128xf32>,
    } else {
    }
    %c0 = arith.constant 0 : index
    %c0_1 = arith.constant 0 : index
    %c0_2 = arith.constant 0 : index
    %c0_3 = arith.constant 0 : index
    %3 = vector.load %arg4[%c0, %c0_1, %c0_2, %c0_3] : memref<1x1x18x128xbf16, #tpu.memory_space<vmem>>, vector<1x1x16x128xbf16>
    %4 = vector.shape_cast %3 : vector<1x1x16x128xbf16> to vector<16x128xbf16>
    %c0_4 = arith.constant 0 : index
    %c0_5 = arith.constant 0 : index
    %c0_6 = arith.constant 0 : index
    %c0_7 = arith.constant 0 : index
    %5 = vector.load %arg5[%c0_4, %c0_5, %c0_6, %c0_7] : memref<1x3x128x128xbf16, #tpu.memory_space<vmem>>, vector<1x1x128x128xbf16>
    %6 = vector.shape_cast %5 : vector<1x1x128x128xbf16> to vector<128x128xbf16>
    %cst = arith.constant dense<0.000000e+00> : vector<16x128xf32>
    %7 = tpu.matmul %4, %6, %cst {dimension_numbers = #tpu.dot_dimension_numbers<[1], [0], [0], [1], [0, 0, 1, 1], [], []>} : vector<16x128xbf16>, vector<128x128xbf16>, vector<16x128xf32> -> vector<16x128xf32>
    %c0_8 = arith.constant 0 : index
    %c0_9 = arith.constant 0 : index
    %c1 = arith.constant 1 : index
    %c0_10 = arith.constant 0 : index
    %8 = vector.load %arg4[%c0_8, %c0_9, %c1, %c0_10] : memref<1x1x18x128xbf16, #tpu.memory_space<vmem>>, vector<1x1x16x128xbf16>
    %9 = vector.shape_cast %8 : vector<1x1x16x128xbf16> to vector<16x128xbf16>
    %c0_11 = arith.constant 0 : index
    %c1_12 = arith.constant 1 : index
    %c0_13 = arith.constant 0 : index
    %c0_14 = arith.constant 0 : index
    %10 = vector.load %arg5[%c0_11, %c1_12, %c0_13, %c0_14] : memref<1x3x128x128xbf16, #tpu.memory_space<vmem>>, vector<1x1x128x128xbf16>
    %11 = vector.shape_cast %10 : vector<1x1x128x128xbf16> to vector<128x128xbf16>
    %cst_15 = arith.constant dense<0.000000e+00> : vector<16x128xf32>
    %12 = tpu.matmul %9, %11, %cst_15 {dimension_numbers = #tpu.dot_dimension_numbers<[1], [0], [0], [1], [0, 0, 1, 1], [], []>} : vector<16x128xbf16>, vector<128x128xbf16>, vector<16x128xf32> -> vector<16x128xf32>
    %13 = arith.addf %7, %12 : vector<16x128xf32>
    %c0_16 = arith.constant 0 : index
    %c0_17 = arith.constant 0 : index
    %c2 = arith.constant 2 : index
    %c0_18 = arith.constant 0 : index
    %14 = vector.load %arg4[%c0_16, %c0_17, %c2, %c0_18] : memref<1x1x18x128xbf16, #tpu.memory_space<vmem>>, vector<1x1x16x128xbf16>
    %15 = vector.shape_cast %14 : vector<1x1x16x128xbf16> to vector<16x128xbf16>
    %c0_19 = arith.constant 0 : index
    %c2_20 = arith.constant 2 : index
    %c0_21 = arith.constant 0 : index
    %c0_22 = arith.constant 0 : index
    %16 = vector.load %arg5[%c0_19, %c2_20, %c0_21, %c0_22] : memref<1x3x128x128xbf16, #tpu.memory_space<vmem>>, vector<1x1x128x128xbf16>
    %17 = vector.shape_cast %16 : vector<1x1x128x128xbf16> to vector<128x128xbf16>
    %cst_23 = arith.constant dense<0.000000e+00> : vector<16x128xf32>
    %18 = tpu.matmul %15, %17, %cst_23 {dimension_numbers = #tpu.dot_dimension_numbers<[1], [0], [0], [1], [0, 0, 1, 1], [], []>} : vector<16x128xbf16>, vector<128x128xbf16>, vector<16x128xf32> -> vector<16x128xf32>
    %19 = arith.addf %13, %18 : vector<16x128xf32>
    %c0_24 = arith.constant 0 : index
    %c0_25 = arith.constant 0 : index
    %20 = vector.load %arg8[%c0_24, %c0_25] : memref<16x128xf32, #tpu.memory_space<vmem>>, vector<16x128xf32>
    %21 = arith.addf %20, %19 : vector<16x128xf32>
    %c0_26 = arith.constant 0 : index
    %c0_27 = arith.constant 0 : index
    %22 = vector.load %arg8[%c0_26, %c0_27] : memref<16x128xf32, #tpu.memory_space<vmem>>, vector<16x128xf32>
    tpu.vector_store %arg8[%c0_26, %c0_27], %21 {strides = array<i32>} : memref<16x128xf32, #tpu.memory_space<vmem>>, vector<16x128xf32>,
    %c2_i32 = arith.constant 2 : i32
    %23 = arith.cmpi eq, %arg3, %c2_i32 : i32
    %24 = arith.extui %23 : i1 to i32
    %c0_i32_28 = arith.constant 0 : i32
    %25 = arith.cmpi ne, %24, %c0_i32_28 : i32
    scf.if %25 {
      %c0_29 = arith.constant 0 : index
      %c0_30 = arith.constant 0 : index
      %26 = vector.load %arg8[%c0_29, %c0_30] : memref<16x128xf32, #tpu.memory_space<vmem>>, vector<16x128xf32>
      %c0_31 = arith.constant 0 : index
      %c0_32 = arith.constant 0 : index
      %27 = vector.load %arg6[%c0_31, %c0_32] : memref<1x128xf32, #tpu.memory_space<vmem>>, vector<1x128xf32>
      %28 = vector.broadcast %27 : vector<1x128xf32> to vector<16x128xf32>
      %29 = arith.addf %26, %28 : vector<16x128xf32>
      %cst_33 = arith.constant 0.000000e+00 : f32
      %30 = vector.broadcast %cst_33 : f32 to vector<16x128xf32>
      %31 = arith.maximumf %29, %30 : vector<16x128xf32>
      %32 = arith.truncf %31 : vector<16x128xf32> to vector<16x128xbf16>
      %c0_34 = arith.constant 0 : index
      %c0_35 = arith.constant 0 : index
      %c0_36 = arith.constant 0 : index
      %c0_37 = arith.constant 0 : index
      %33 = vector.load %arg7[%c0_34, %c0_35, %c0_36, %c0_37] : memref<1x1x16x128xbf16, #tpu.memory_space<vmem>>, vector<1x1x16x128xbf16>
      %34 = vector.shape_cast %33 : vector<1x1x16x128xbf16> to vector<16x128xbf16>
      %35 = vector.shape_cast %32 : vector<16x128xbf16> to vector<1x1x16x128xbf16>
      tpu.vector_store %arg7[%c0_34, %c0_35, %c0_36, %c0_37], %35 {strides = array<i32>} : memref<1x1x16x128xbf16, #tpu.memory_space<vmem>>, vector<1x1x16x128xbf16>,
    } else {
    }
    return
  }
  func.func @transform_0(%arg0: i32, %arg1: i32, %arg2: i32, %arg3: i32) -> (i32, i32, i32, i32) {
    %c1_i32 = arith.constant 1 : i32
    %0 = arith.muli %arg1, %c1_i32 : i32
    %1 = arith.addi %0, %arg3 : i32
    %c0_i32 = arith.constant 0 : i32
    %c0_i32_0 = arith.constant 0 : i32
    %c0_i32_1 = arith.constant 0 : i32
    return %arg0, %1, %c0_i32, %c0_i32_0 : i32, i32, i32, i32
  }
  func.func @transform_1(%arg0: i32, %arg1: i32, %arg2: i32, %arg3: i32) -> (i32, i32, i32, i32) {
    %c0_i32 = arith.constant 0 : i32
    %c0_i32_0 = arith.constant 0 : i32
    %c0_i32_1 = arith.constant 0 : i32
    return %arg3, %c0_i32, %c0_i32_0, %arg2 : i32, i32, i32, i32
  }
  func.func @transform_2(%arg0: i32, %arg1: i32, %arg2: i32, %arg3: i32) -> (i32, i32) {
    %c0_i32 = arith.constant 0 : i32
    %c0_i32_0 = arith.constant 0 : i32
    return %c0_i32, %arg2 : i32, i32
  }
  func.func @transform_3(%arg0: i32, %arg1: i32, %arg2: i32, %arg3: i32) -> (i32, i32, i32, i32) {
    %c0_i32 = arith.constant 0 : i32
    %c0_i32_0 = arith.constant 0 : i32
    return %arg0, %arg1, %c0_i32, %arg2 : i32, i32, i32, i32
  }
}

module attributes {stable_mosaic.version = 11 : i64} {
  func.func @_conv_bn_kernel(%arg0: i32, %arg1: i32, %arg2: i32, %arg3: i32, %arg4: memref<1x1x18x128xbf16, #tpu.memory_space<vmem>>, %arg5: memref<1x3x128x128xbf16, #tpu.memory_space<vmem>>, %arg6: memref<1x128xf32, #tpu.memory_space<vmem>>, %arg7: memref<1x1x16x128xbf16, #tpu.memory_space<vmem>>, %arg8: memref<1x1x16x128xbf16, #tpu.memory_space<vmem>>, %arg9: memref<16x128xf32, #tpu.memory_space<vmem>>) attributes {dimension_semantics = [#tpu.dimension_semantics<parallel>, #tpu.dimension_semantics<parallel>, #tpu.dimension_semantics<parallel>, #tpu.dimension_semantics<arbitrary>], iteration_bounds = array<i64: 2, 16, 1, 3>, scalar_prefetch = 0 : i64, scratch_operands = 1 : i64, tpu.core_type = #tpu.core_type<tc>, window_params = [{transform_indices = @transform_0, window_bounds = array<i64: 1, 1, 18, 128>}, {transform_indices = @transform_1, window_bounds = array<i64: 1, 3, 128, 128>}, {transform_indices = @transform_2, window_bounds = array<i64: 1, 128>}, {transform_indices = @transform_3, window_bounds = array<i64: 1, 1, 16, 128>}, {transform_indices = @transform_4, window_bounds = array<i64: 1, 1, 16, 128>}]} {
    %c0_i32 = arith.constant 0 : i32
    %0 = arith.cmpi eq, %arg3, %c0_i32 : i32
    %1 = arith.extui %0 : i1 to i32
    %c0_i32_0 = arith.constant 0 : i32
    %2 = arith.cmpi ne, %1, %c0_i32_0 : i32
    scf.if %2 {
      %cst_29 = arith.constant 0.000000e+00 : f32
      %26 = vector.broadcast %cst_29 : f32 to vector<16x128xf32>
      %c0_30 = arith.constant 0 : index
      %c0_31 = arith.constant 0 : index
      %27 = vector.load %arg9[%c0_30, %c0_31] : memref<16x128xf32, #tpu.memory_space<vmem>>, vector<16x128xf32>
      tpu.vector_store %arg9[%c0_30, %c0_31], %26 {strides = array<i32>} : memref<16x128xf32, #tpu.memory_space<vmem>>, vector<16x128xf32>,
    } else {
    }
    %c0 = arith.constant 0 : index
    %c0_1 = arith.constant 0 : index
    %c0_2 = arith.constant 0 : index
    %c0_3 = arith.constant 0 : index
    %3 = vector.load %arg4[%c0, %c0_1, %c0_2, %c0_3] : memref<1x1x18x128xbf16, #tpu.memory_space<vmem>>, vector<1x1x16x128xbf16>
    %4 = vector.shape_cast %3 : vector<1x1x16x128xbf16> to vector<16x128xbf16>
    %c0_4 = arith.constant 0 : index
    %c0_5 = arith.constant 0 : index
    %c0_6 = arith.constant 0 : index
    %c0_7 = arith.constant 0 : index
    %5 = vector.load %arg5[%c0_4, %c0_5, %c0_6, %c0_7] : memref<1x3x128x128xbf16, #tpu.memory_space<vmem>>, vector<1x1x128x128xbf16>
    %6 = vector.shape_cast %5 : vector<1x1x128x128xbf16> to vector<128x128xbf16>
    %cst = arith.constant dense<0.000000e+00> : vector<16x128xf32>
    %7 = tpu.matmul %4, %6, %cst {dimension_numbers = #tpu.dot_dimension_numbers<[1], [0], [0], [1], [0, 0, 1, 1], [], []>} : vector<16x128xbf16>, vector<128x128xbf16>, vector<16x128xf32> -> vector<16x128xf32>
    %c0_8 = arith.constant 0 : index
    %c0_9 = arith.constant 0 : index
    %c1 = arith.constant 1 : index
    %c0_10 = arith.constant 0 : index
    %8 = vector.load %arg4[%c0_8, %c0_9, %c1, %c0_10] : memref<1x1x18x128xbf16, #tpu.memory_space<vmem>>, vector<1x1x16x128xbf16>
    %9 = vector.shape_cast %8 : vector<1x1x16x128xbf16> to vector<16x128xbf16>
    %c0_11 = arith.constant 0 : index
    %c1_12 = arith.constant 1 : index
    %c0_13 = arith.constant 0 : index
    %c0_14 = arith.constant 0 : index
    %10 = vector.load %arg5[%c0_11, %c1_12, %c0_13, %c0_14] : memref<1x3x128x128xbf16, #tpu.memory_space<vmem>>, vector<1x1x128x128xbf16>
    %11 = vector.shape_cast %10 : vector<1x1x128x128xbf16> to vector<128x128xbf16>
    %cst_15 = arith.constant dense<0.000000e+00> : vector<16x128xf32>
    %12 = tpu.matmul %9, %11, %cst_15 {dimension_numbers = #tpu.dot_dimension_numbers<[1], [0], [0], [1], [0, 0, 1, 1], [], []>} : vector<16x128xbf16>, vector<128x128xbf16>, vector<16x128xf32> -> vector<16x128xf32>
    %13 = arith.addf %7, %12 : vector<16x128xf32>
    %c0_16 = arith.constant 0 : index
    %c0_17 = arith.constant 0 : index
    %c2 = arith.constant 2 : index
    %c0_18 = arith.constant 0 : index
    %14 = vector.load %arg4[%c0_16, %c0_17, %c2, %c0_18] : memref<1x1x18x128xbf16, #tpu.memory_space<vmem>>, vector<1x1x16x128xbf16>
    %15 = vector.shape_cast %14 : vector<1x1x16x128xbf16> to vector<16x128xbf16>
    %c0_19 = arith.constant 0 : index
    %c2_20 = arith.constant 2 : index
    %c0_21 = arith.constant 0 : index
    %c0_22 = arith.constant 0 : index
    %16 = vector.load %arg5[%c0_19, %c2_20, %c0_21, %c0_22] : memref<1x3x128x128xbf16, #tpu.memory_space<vmem>>, vector<1x1x128x128xbf16>
    %17 = vector.shape_cast %16 : vector<1x1x128x128xbf16> to vector<128x128xbf16>
    %cst_23 = arith.constant dense<0.000000e+00> : vector<16x128xf32>
    %18 = tpu.matmul %15, %17, %cst_23 {dimension_numbers = #tpu.dot_dimension_numbers<[1], [0], [0], [1], [0, 0, 1, 1], [], []>} : vector<16x128xbf16>, vector<128x128xbf16>, vector<16x128xf32> -> vector<16x128xf32>
    %19 = arith.addf %13, %18 : vector<16x128xf32>
    %c0_24 = arith.constant 0 : index
    %c0_25 = arith.constant 0 : index
    %20 = vector.load %arg9[%c0_24, %c0_25] : memref<16x128xf32, #tpu.memory_space<vmem>>, vector<16x128xf32>
    %21 = arith.addf %20, %19 : vector<16x128xf32>
    %c0_26 = arith.constant 0 : index
    %c0_27 = arith.constant 0 : index
    %22 = vector.load %arg9[%c0_26, %c0_27] : memref<16x128xf32, #tpu.memory_space<vmem>>, vector<16x128xf32>
    tpu.vector_store %arg9[%c0_26, %c0_27], %21 {strides = array<i32>} : memref<16x128xf32, #tpu.memory_space<vmem>>, vector<16x128xf32>,
    %c2_i32 = arith.constant 2 : i32
    %23 = arith.cmpi eq, %arg3, %c2_i32 : i32
    %24 = arith.extui %23 : i1 to i32
    %c0_i32_28 = arith.constant 0 : i32
    %25 = arith.cmpi ne, %24, %c0_i32_28 : i32
    scf.if %25 {
      %c0_29 = arith.constant 0 : index
      %c0_30 = arith.constant 0 : index
      %26 = vector.load %arg9[%c0_29, %c0_30] : memref<16x128xf32, #tpu.memory_space<vmem>>, vector<16x128xf32>
      %c0_31 = arith.constant 0 : index
      %c0_32 = arith.constant 0 : index
      %27 = vector.load %arg6[%c0_31, %c0_32] : memref<1x128xf32, #tpu.memory_space<vmem>>, vector<1x128xf32>
      %28 = vector.broadcast %27 : vector<1x128xf32> to vector<16x128xf32>
      %29 = arith.addf %26, %28 : vector<16x128xf32>
      %c0_33 = arith.constant 0 : index
      %c0_34 = arith.constant 0 : index
      %c0_35 = arith.constant 0 : index
      %c0_36 = arith.constant 0 : index
      %30 = vector.load %arg7[%c0_33, %c0_34, %c0_35, %c0_36] : memref<1x1x16x128xbf16, #tpu.memory_space<vmem>>, vector<1x1x16x128xbf16>
      %31 = vector.shape_cast %30 : vector<1x1x16x128xbf16> to vector<16x128xbf16>
      %32 = arith.extf %31 : vector<16x128xbf16> to vector<16x128xf32>
      %33 = arith.addf %29, %32 : vector<16x128xf32>
      %cst_37 = arith.constant 0.000000e+00 : f32
      %34 = vector.broadcast %cst_37 : f32 to vector<16x128xf32>
      %35 = arith.maximumf %33, %34 : vector<16x128xf32>
      %36 = arith.truncf %35 : vector<16x128xf32> to vector<16x128xbf16>
      %c0_38 = arith.constant 0 : index
      %c0_39 = arith.constant 0 : index
      %c0_40 = arith.constant 0 : index
      %c0_41 = arith.constant 0 : index
      %37 = vector.load %arg8[%c0_38, %c0_39, %c0_40, %c0_41] : memref<1x1x16x128xbf16, #tpu.memory_space<vmem>>, vector<1x1x16x128xbf16>
      %38 = vector.shape_cast %37 : vector<1x1x16x128xbf16> to vector<16x128xbf16>
      %39 = vector.shape_cast %36 : vector<16x128xbf16> to vector<1x1x16x128xbf16>
      tpu.vector_store %arg8[%c0_38, %c0_39, %c0_40, %c0_41], %39 {strides = array<i32>} : memref<1x1x16x128xbf16, #tpu.memory_space<vmem>>, vector<1x1x16x128xbf16>,
    } else {
    }
    return
  }
  func.func @transform_0(%arg0: i32, %arg1: i32, %arg2: i32, %arg3: i32) -> (i32, i32, i32, i32) {
    %c1_i32 = arith.constant 1 : i32
    %0 = arith.muli %arg1, %c1_i32 : i32
    %1 = arith.addi %0, %arg3 : i32
    %c0_i32 = arith.constant 0 : i32
    %c0_i32_0 = arith.constant 0 : i32
    %c0_i32_1 = arith.constant 0 : i32
    return %arg0, %1, %c0_i32, %c0_i32_0 : i32, i32, i32, i32
  }
  func.func @transform_1(%arg0: i32, %arg1: i32, %arg2: i32, %arg3: i32) -> (i32, i32, i32, i32) {
    %c0_i32 = arith.constant 0 : i32
    %c0_i32_0 = arith.constant 0 : i32
    %c0_i32_1 = arith.constant 0 : i32
    return %arg3, %c0_i32, %c0_i32_0, %arg2 : i32, i32, i32, i32
  }
  func.func @transform_2(%arg0: i32, %arg1: i32, %arg2: i32, %arg3: i32) -> (i32, i32) {
    %c0_i32 = arith.constant 0 : i32
    %c0_i32_0 = arith.constant 0 : i32
    return %c0_i32, %arg2 : i32, i32
  }
  func.func @transform_3(%arg0: i32, %arg1: i32, %arg2: i32, %arg3: i32) -> (i32, i32, i32, i32) {
    %c0_i32 = arith.constant 0 : i32
    %c0_i32_0 = arith.constant 0 : i32
    return %arg0, %arg1, %c0_i32, %arg2 : i32, i32, i32, i32
  }
  func.func @transform_4(%arg0: i32, %arg1: i32, %arg2: i32, %arg3: i32) -> (i32, i32, i32, i32) {
    %c0_i32 = arith.constant 0 : i32
    %c0_i32_0 = arith.constant 0 : i32
    return %arg0, %arg1, %c0_i32, %arg2 : i32, i32, i32, i32
  }
}

module attributes {stable_mosaic.version = 11 : i64} {
  func.func @_conv_bn_kernel(%arg0: i32, %arg1: i32, %arg2: i32, %arg3: i32, %arg4: memref<1x1x18x128xbf16, #tpu.memory_space<vmem>>, %arg5: memref<1x3x128x128xbf16, #tpu.memory_space<vmem>>, %arg6: memref<1x128xf32, #tpu.memory_space<vmem>>, %arg7: memref<1x1x8x128xbf16, #tpu.memory_space<vmem>>, %arg8: memref<8x128xf32, #tpu.memory_space<vmem>>) attributes {dimension_semantics = [#tpu.dimension_semantics<parallel>, #tpu.dimension_semantics<parallel>, #tpu.dimension_semantics<parallel>, #tpu.dimension_semantics<arbitrary>], iteration_bounds = array<i64: 2, 8, 1, 3>, scalar_prefetch = 0 : i64, scratch_operands = 1 : i64, tpu.core_type = #tpu.core_type<tc>, window_params = [{transform_indices = @transform_0, window_bounds = array<i64: 1, 1, 18, 128>}, {transform_indices = @transform_1, window_bounds = array<i64: 1, 3, 128, 128>}, {transform_indices = @transform_2, window_bounds = array<i64: 1, 128>}, {transform_indices = @transform_3, window_bounds = array<i64: 1, 1, 8, 128>}]} {
    %c0_i32 = arith.constant 0 : i32
    %0 = arith.cmpi eq, %arg3, %c0_i32 : i32
    %1 = arith.extui %0 : i1 to i32
    %c0_i32_0 = arith.constant 0 : i32
    %2 = arith.cmpi ne, %1, %c0_i32_0 : i32
    scf.if %2 {
      %cst_28 = arith.constant 0.000000e+00 : f32
      %26 = vector.broadcast %cst_28 : f32 to vector<8x128xf32>
      %c0_29 = arith.constant 0 : index
      %c0_30 = arith.constant 0 : index
      %27 = vector.load %arg8[%c0_29, %c0_30] : memref<8x128xf32, #tpu.memory_space<vmem>>, vector<8x128xf32>
      tpu.vector_store %arg8[%c0_29, %c0_30], %26 {strides = array<i32>} : memref<8x128xf32, #tpu.memory_space<vmem>>, vector<8x128xf32>,
    } else {
    }
    %c0 = arith.constant 0 : index
    %c0_1 = arith.constant 0 : index
    %c0_2 = arith.constant 0 : index
    %c0_3 = arith.constant 0 : index
    %3 = vector.load %arg4[%c0, %c0_1, %c0_2, %c0_3] : memref<1x1x18x128xbf16, #tpu.memory_space<vmem>>, vector<1x1x8x128xbf16>
    %4 = vector.shape_cast %3 : vector<1x1x8x128xbf16> to vector<8x128xbf16>
    %c0_4 = arith.constant 0 : index
    %c0_5 = arith.constant 0 : index
    %c0_6 = arith.constant 0 : index
    %c0_7 = arith.constant 0 : index
    %5 = vector.load %arg5[%c0_4, %c0_5, %c0_6, %c0_7] : memref<1x3x128x128xbf16, #tpu.memory_space<vmem>>, vector<1x1x128x128xbf16>
    %6 = vector.shape_cast %5 : vector<1x1x128x128xbf16> to vector<128x128xbf16>
    %cst = arith.constant dense<0.000000e+00> : vector<8x128xf32>
    %7 = tpu.matmul %4, %6, %cst {dimension_numbers = #tpu.dot_dimension_numbers<[1], [0], [0], [1], [0, 0, 1, 1], [], []>} : vector<8x128xbf16>, vector<128x128xbf16>, vector<8x128xf32> -> vector<8x128xf32>
    %c0_8 = arith.constant 0 : index
    %c0_9 = arith.constant 0 : index
    %c9 = arith.constant 9 : index
    %c0_10 = arith.constant 0 : index
    %8 = vector.load %arg4[%c0_8, %c0_9, %c9, %c0_10] : memref<1x1x18x128xbf16, #tpu.memory_space<vmem>>, vector<1x1x8x128xbf16>
    %9 = vector.shape_cast %8 : vector<1x1x8x128xbf16> to vector<8x128xbf16>
    %c0_11 = arith.constant 0 : index
    %c1 = arith.constant 1 : index
    %c0_12 = arith.constant 0 : index
    %c0_13 = arith.constant 0 : index
    %10 = vector.load %arg5[%c0_11, %c1, %c0_12, %c0_13] : memref<1x3x128x128xbf16, #tpu.memory_space<vmem>>, vector<1x1x128x128xbf16>
    %11 = vector.shape_cast %10 : vector<1x1x128x128xbf16> to vector<128x128xbf16>
    %cst_14 = arith.constant dense<0.000000e+00> : vector<8x128xf32>
    %12 = tpu.matmul %9, %11, %cst_14 {dimension_numbers = #tpu.dot_dimension_numbers<[1], [0], [0], [1], [0, 0, 1, 1], [], []>} : vector<8x128xbf16>, vector<128x128xbf16>, vector<8x128xf32> -> vector<8x128xf32>
    %13 = arith.addf %7, %12 : vector<8x128xf32>
    %c0_15 = arith.constant 0 : index
    %c0_16 = arith.constant 0 : index
    %c1_17 = arith.constant 1 : index
    %c0_18 = arith.constant 0 : index
    %14 = vector.load %arg4[%c0_15, %c0_16, %c1_17, %c0_18] : memref<1x1x18x128xbf16, #tpu.memory_space<vmem>>, vector<1x1x8x128xbf16>
    %15 = vector.shape_cast %14 : vector<1x1x8x128xbf16> to vector<8x128xbf16>
    %c0_19 = arith.constant 0 : index
    %c2 = arith.constant 2 : index
    %c0_20 = arith.constant 0 : index
    %c0_21 = arith.constant 0 : index
    %16 = vector.load %arg5[%c0_19, %c2, %c0_20, %c0_21] : memref<1x3x128x128xbf16, #tpu.memory_space<vmem>>, vector<1x1x128x128xbf16>
    %17 = vector.shape_cast %16 : vector<1x1x128x128xbf16> to vector<128x128xbf16>
    %cst_22 = arith.constant dense<0.000000e+00> : vector<8x128xf32>
    %18 = tpu.matmul %15, %17, %cst_22 {dimension_numbers = #tpu.dot_dimension_numbers<[1], [0], [0], [1], [0, 0, 1, 1], [], []>} : vector<8x128xbf16>, vector<128x128xbf16>, vector<8x128xf32> -> vector<8x128xf32>
    %19 = arith.addf %13, %18 : vector<8x128xf32>
    %c0_23 = arith.constant 0 : index
    %c0_24 = arith.constant 0 : index
    %20 = vector.load %arg8[%c0_23, %c0_24] : memref<8x128xf32, #tpu.memory_space<vmem>>, vector<8x128xf32>
    %21 = arith.addf %20, %19 : vector<8x128xf32>
    %c0_25 = arith.constant 0 : index
    %c0_26 = arith.constant 0 : index
    %22 = vector.load %arg8[%c0_25, %c0_26] : memref<8x128xf32, #tpu.memory_space<vmem>>, vector<8x128xf32>
    tpu.vector_store %arg8[%c0_25, %c0_26], %21 {strides = array<i32>} : memref<8x128xf32, #tpu.memory_space<vmem>>, vector<8x128xf32>,
    %c2_i32 = arith.constant 2 : i32
    %23 = arith.cmpi eq, %arg3, %c2_i32 : i32
    %24 = arith.extui %23 : i1 to i32
    %c0_i32_27 = arith.constant 0 : i32
    %25 = arith.cmpi ne, %24, %c0_i32_27 : i32
    scf.if %25 {
      %c0_28 = arith.constant 0 : index
      %c0_29 = arith.constant 0 : index
      %26 = vector.load %arg8[%c0_28, %c0_29] : memref<8x128xf32, #tpu.memory_space<vmem>>, vector<8x128xf32>
      %c0_30 = arith.constant 0 : index
      %c0_31 = arith.constant 0 : index
      %27 = vector.load %arg6[%c0_30, %c0_31] : memref<1x128xf32, #tpu.memory_space<vmem>>, vector<1x128xf32>
      %28 = vector.broadcast %27 : vector<1x128xf32> to vector<8x128xf32>
      %29 = arith.addf %26, %28 : vector<8x128xf32>
      %cst_32 = arith.constant 0.000000e+00 : f32
      %30 = vector.broadcast %cst_32 : f32 to vector<8x128xf32>
      %31 = arith.maximumf %29, %30 : vector<8x128xf32>
      %32 = arith.truncf %31 : vector<8x128xf32> to vector<8x128xbf16>
      %c0_33 = arith.constant 0 : index
      %c0_34 = arith.constant 0 : index
      %c0_35 = arith.constant 0 : index
      %c0_36 = arith.constant 0 : index
      %33 = vector.load %arg7[%c0_33, %c0_34, %c0_35, %c0_36] : memref<1x1x8x128xbf16, #tpu.memory_space<vmem>>, vector<1x1x8x128xbf16>
      %34 = vector.shape_cast %33 : vector<1x1x8x128xbf16> to vector<8x128xbf16>
      %35 = vector.shape_cast %32 : vector<8x128xbf16> to vector<1x1x8x128xbf16>
      tpu.vector_store %arg7[%c0_33, %c0_34, %c0_35, %c0_36], %35 {strides = array<i32>} : memref<1x1x8x128xbf16, #tpu.memory_space<vmem>>, vector<1x1x8x128xbf16>,
    } else {
    }
    return
  }
  func.func @transform_0(%arg0: i32, %arg1: i32, %arg2: i32, %arg3: i32) -> (i32, i32, i32, i32) {
    %c2_i32 = arith.constant 2 : i32
    %0 = arith.muli %arg1, %c2_i32 : i32
    %1 = arith.addi %0, %arg3 : i32
    %c0_i32 = arith.constant 0 : i32
    %c0_i32_0 = arith.constant 0 : i32
    %c0_i32_1 = arith.constant 0 : i32
    return %arg0, %1, %c0_i32, %c0_i32_0 : i32, i32, i32, i32
  }
  func.func @transform_1(%arg0: i32, %arg1: i32, %arg2: i32, %arg3: i32) -> (i32, i32, i32, i32) {
    %c0_i32 = arith.constant 0 : i32
    %c0_i32_0 = arith.constant 0 : i32
    %c0_i32_1 = arith.constant 0 : i32
    return %arg3, %c0_i32, %c0_i32_0, %arg2 : i32, i32, i32, i32
  }
  func.func @transform_2(%arg0: i32, %arg1: i32, %arg2: i32, %arg3: i32) -> (i32, i32) {
    %c0_i32 = arith.constant 0 : i32
    %c0_i32_0 = arith.constant 0 : i32
    return %c0_i32, %arg2 : i32, i32
  }
  func.func @transform_3(%arg0: i32, %arg1: i32, %arg2: i32, %arg3: i32) -> (i32, i32, i32, i32) {
    %c0_i32 = arith.constant 0 : i32
    %c0_i32_0 = arith.constant 0 : i32
    return %arg0, %arg1, %c0_i32, %arg2 : i32, i32, i32, i32
  }
}

module attributes {stable_mosaic.version = 11 : i64} {
  func.func @_conv_bn_kernel(%arg0: i32, %arg1: i32, %arg2: i32, %arg3: i32, %arg4: memref<1x1x16x128xbf16, #tpu.memory_space<vmem>>, %arg5: memref<1x1x128x128xbf16, #tpu.memory_space<vmem>>, %arg6: memref<1x128xf32, #tpu.memory_space<vmem>>, %arg7: memref<1x1x8x128xbf16, #tpu.memory_space<vmem>>, %arg8: memref<8x128xf32, #tpu.memory_space<vmem>>) attributes {dimension_semantics = [#tpu.dimension_semantics<parallel>, #tpu.dimension_semantics<parallel>, #tpu.dimension_semantics<parallel>, #tpu.dimension_semantics<arbitrary>], iteration_bounds = array<i64: 2, 8, 1, 1>, scalar_prefetch = 0 : i64, scratch_operands = 1 : i64, tpu.core_type = #tpu.core_type<tc>, window_params = [{transform_indices = @transform_0, window_bounds = array<i64: 1, 1, 16, 128>}, {transform_indices = @transform_1, window_bounds = array<i64: 1, 1, 128, 128>}, {transform_indices = @transform_2, window_bounds = array<i64: 1, 128>}, {transform_indices = @transform_3, window_bounds = array<i64: 1, 1, 8, 128>}]} {
    %c0_i32 = arith.constant 0 : i32
    %0 = arith.cmpi eq, %arg3, %c0_i32 : i32
    %1 = arith.extui %0 : i1 to i32
    %c0_i32_0 = arith.constant 0 : i32
    %2 = arith.cmpi ne, %1, %c0_i32_0 : i32
    scf.if %2 {
      %cst_14 = arith.constant 0.000000e+00 : f32
      %14 = vector.broadcast %cst_14 : f32 to vector<8x128xf32>
      %c0_15 = arith.constant 0 : index
      %c0_16 = arith.constant 0 : index
      %15 = vector.load %arg8[%c0_15, %c0_16] : memref<8x128xf32, #tpu.memory_space<vmem>>, vector<8x128xf32>
      tpu.vector_store %arg8[%c0_15, %c0_16], %14 {strides = array<i32>} : memref<8x128xf32, #tpu.memory_space<vmem>>, vector<8x128xf32>,
    } else {
    }
    %c0 = arith.constant 0 : index
    %c0_1 = arith.constant 0 : index
    %c0_2 = arith.constant 0 : index
    %c0_3 = arith.constant 0 : index
    %3 = vector.load %arg4[%c0, %c0_1, %c0_2, %c0_3] : memref<1x1x16x128xbf16, #tpu.memory_space<vmem>>, vector<1x1x8x128xbf16>
    %4 = vector.shape_cast %3 : vector<1x1x8x128xbf16> to vector<8x128xbf16>
    %c0_4 = arith.constant 0 : index
    %c0_5 = arith.constant 0 : index
    %c0_6 = arith.constant 0 : index
    %c0_7 = arith.constant 0 : index
    %5 = vector.load %arg5[%c0_4, %c0_5, %c0_6, %c0_7] : memref<1x1x128x128xbf16, #tpu.memory_space<vmem>>, vector<1x1x128x128xbf16>
    %6 = vector.shape_cast %5 : vector<1x1x128x128xbf16> to vector<128x128xbf16>
    %cst = arith.constant dense<0.000000e+00> : vector<8x128xf32>
    %7 = tpu.matmul %4, %6, %cst {dimension_numbers = #tpu.dot_dimension_numbers<[1], [0], [0], [1], [0, 0, 1, 1], [], []>} : vector<8x128xbf16>, vector<128x128xbf16>, vector<8x128xf32> -> vector<8x128xf32>
    %c0_8 = arith.constant 0 : index
    %c0_9 = arith.constant 0 : index
    %8 = vector.load %arg8[%c0_8, %c0_9] : memref<8x128xf32, #tpu.memory_space<vmem>>, vector<8x128xf32>
    %9 = arith.addf %8, %7 : vector<8x128xf32>
    %c0_10 = arith.constant 0 : index
    %c0_11 = arith.constant 0 : index
    %10 = vector.load %arg8[%c0_10, %c0_11] : memref<8x128xf32, #tpu.memory_space<vmem>>, vector<8x128xf32>
    tpu.vector_store %arg8[%c0_10, %c0_11], %9 {strides = array<i32>} : memref<8x128xf32, #tpu.memory_space<vmem>>, vector<8x128xf32>,
    %c0_i32_12 = arith.constant 0 : i32
    %11 = arith.cmpi eq, %arg3, %c0_i32_12 : i32
    %12 = arith.extui %11 : i1 to i32
    %c0_i32_13 = arith.constant 0 : i32
    %13 = arith.cmpi ne, %12, %c0_i32_13 : i32
    scf.if %13 {
      %c0_14 = arith.constant 0 : index
      %c0_15 = arith.constant 0 : index
      %14 = vector.load %arg8[%c0_14, %c0_15] : memref<8x128xf32, #tpu.memory_space<vmem>>, vector<8x128xf32>
      %c0_16 = arith.constant 0 : index
      %c0_17 = arith.constant 0 : index
      %15 = vector.load %arg6[%c0_16, %c0_17] : memref<1x128xf32, #tpu.memory_space<vmem>>, vector<1x128xf32>
      %16 = vector.broadcast %15 : vector<1x128xf32> to vector<8x128xf32>
      %17 = arith.addf %14, %16 : vector<8x128xf32>
      %18 = arith.truncf %17 : vector<8x128xf32> to vector<8x128xbf16>
      %c0_18 = arith.constant 0 : index
      %c0_19 = arith.constant 0 : index
      %c0_20 = arith.constant 0 : index
      %c0_21 = arith.constant 0 : index
      %19 = vector.load %arg7[%c0_18, %c0_19, %c0_20, %c0_21] : memref<1x1x8x128xbf16, #tpu.memory_space<vmem>>, vector<1x1x8x128xbf16>
      %20 = vector.shape_cast %19 : vector<1x1x8x128xbf16> to vector<8x128xbf16>
      %21 = vector.shape_cast %18 : vector<8x128xbf16> to vector<1x1x8x128xbf16>
      tpu.vector_store %arg7[%c0_18, %c0_19, %c0_20, %c0_21], %21 {strides = array<i32>} : memref<1x1x8x128xbf16, #tpu.memory_space<vmem>>, vector<1x1x8x128xbf16>,
    } else {
    }
    return
  }
  func.func @transform_0(%arg0: i32, %arg1: i32, %arg2: i32, %arg3: i32) -> (i32, i32, i32, i32) {
    %c2_i32 = arith.constant 2 : i32
    %0 = arith.muli %arg1, %c2_i32 : i32
    %1 = arith.addi %0, %arg3 : i32
    %c0_i32 = arith.constant 0 : i32
    %c0_i32_0 = arith.constant 0 : i32
    %c0_i32_1 = arith.constant 0 : i32
    return %arg0, %1, %c0_i32, %c0_i32_0 : i32, i32, i32, i32
  }
  func.func @transform_1(%arg0: i32, %arg1: i32, %arg2: i32, %arg3: i32) -> (i32, i32, i32, i32) {
    %c0_i32 = arith.constant 0 : i32
    %c0_i32_0 = arith.constant 0 : i32
    %c0_i32_1 = arith.constant 0 : i32
    return %arg3, %c0_i32, %c0_i32_0, %arg2 : i32, i32, i32, i32
  }
  func.func @transform_2(%arg0: i32, %arg1: i32, %arg2: i32, %arg3: i32) -> (i32, i32) {
    %c0_i32 = arith.constant 0 : i32
    %c0_i32_0 = arith.constant 0 : i32
    return %c0_i32, %arg2 : i32, i32
  }
  func.func @transform_3(%arg0: i32, %arg1: i32, %arg2: i32, %arg3: i32) -> (i32, i32, i32, i32) {
    %c0_i32 = arith.constant 0 : i32
    %c0_i32_0 = arith.constant 0 : i32
    return %arg0, %arg1, %c0_i32, %arg2 : i32, i32, i32, i32
  }
}

module attributes {stable_mosaic.version = 11 : i64} {
  func.func @_conv_bn_kernel(%arg0: i32, %arg1: i32, %arg2: i32, %arg3: i32, %arg4: memref<1x1x10x128xbf16, #tpu.memory_space<vmem>>, %arg5: memref<1x3x128x128xbf16, #tpu.memory_space<vmem>>, %arg6: memref<1x128xf32, #tpu.memory_space<vmem>>, %arg7: memref<1x1x8x128xbf16, #tpu.memory_space<vmem>>, %arg8: memref<1x1x8x128xbf16, #tpu.memory_space<vmem>>, %arg9: memref<8x128xf32, #tpu.memory_space<vmem>>) attributes {dimension_semantics = [#tpu.dimension_semantics<parallel>, #tpu.dimension_semantics<parallel>, #tpu.dimension_semantics<parallel>, #tpu.dimension_semantics<arbitrary>], iteration_bounds = array<i64: 2, 8, 1, 3>, scalar_prefetch = 0 : i64, scratch_operands = 1 : i64, tpu.core_type = #tpu.core_type<tc>, window_params = [{transform_indices = @transform_0, window_bounds = array<i64: 1, 1, 10, 128>}, {transform_indices = @transform_1, window_bounds = array<i64: 1, 3, 128, 128>}, {transform_indices = @transform_2, window_bounds = array<i64: 1, 128>}, {transform_indices = @transform_3, window_bounds = array<i64: 1, 1, 8, 128>}, {transform_indices = @transform_4, window_bounds = array<i64: 1, 1, 8, 128>}]} {
    %c0_i32 = arith.constant 0 : i32
    %0 = arith.cmpi eq, %arg3, %c0_i32 : i32
    %1 = arith.extui %0 : i1 to i32
    %c0_i32_0 = arith.constant 0 : i32
    %2 = arith.cmpi ne, %1, %c0_i32_0 : i32
    scf.if %2 {
      %cst_29 = arith.constant 0.000000e+00 : f32
      %26 = vector.broadcast %cst_29 : f32 to vector<8x128xf32>
      %c0_30 = arith.constant 0 : index
      %c0_31 = arith.constant 0 : index
      %27 = vector.load %arg9[%c0_30, %c0_31] : memref<8x128xf32, #tpu.memory_space<vmem>>, vector<8x128xf32>
      tpu.vector_store %arg9[%c0_30, %c0_31], %26 {strides = array<i32>} : memref<8x128xf32, #tpu.memory_space<vmem>>, vector<8x128xf32>,
    } else {
    }
    %c0 = arith.constant 0 : index
    %c0_1 = arith.constant 0 : index
    %c0_2 = arith.constant 0 : index
    %c0_3 = arith.constant 0 : index
    %3 = vector.load %arg4[%c0, %c0_1, %c0_2, %c0_3] : memref<1x1x10x128xbf16, #tpu.memory_space<vmem>>, vector<1x1x8x128xbf16>
    %4 = vector.shape_cast %3 : vector<1x1x8x128xbf16> to vector<8x128xbf16>
    %c0_4 = arith.constant 0 : index
    %c0_5 = arith.constant 0 : index
    %c0_6 = arith.constant 0 : index
    %c0_7 = arith.constant 0 : index
    %5 = vector.load %arg5[%c0_4, %c0_5, %c0_6, %c0_7] : memref<1x3x128x128xbf16, #tpu.memory_space<vmem>>, vector<1x1x128x128xbf16>
    %6 = vector.shape_cast %5 : vector<1x1x128x128xbf16> to vector<128x128xbf16>
    %cst = arith.constant dense<0.000000e+00> : vector<8x128xf32>
    %7 = tpu.matmul %4, %6, %cst {dimension_numbers = #tpu.dot_dimension_numbers<[1], [0], [0], [1], [0, 0, 1, 1], [], []>} : vector<8x128xbf16>, vector<128x128xbf16>, vector<8x128xf32> -> vector<8x128xf32>
    %c0_8 = arith.constant 0 : index
    %c0_9 = arith.constant 0 : index
    %c1 = arith.constant 1 : index
    %c0_10 = arith.constant 0 : index
    %8 = vector.load %arg4[%c0_8, %c0_9, %c1, %c0_10] : memref<1x1x10x128xbf16, #tpu.memory_space<vmem>>, vector<1x1x8x128xbf16>
    %9 = vector.shape_cast %8 : vector<1x1x8x128xbf16> to vector<8x128xbf16>
    %c0_11 = arith.constant 0 : index
    %c1_12 = arith.constant 1 : index
    %c0_13 = arith.constant 0 : index
    %c0_14 = arith.constant 0 : index
    %10 = vector.load %arg5[%c0_11, %c1_12, %c0_13, %c0_14] : memref<1x3x128x128xbf16, #tpu.memory_space<vmem>>, vector<1x1x128x128xbf16>
    %11 = vector.shape_cast %10 : vector<1x1x128x128xbf16> to vector<128x128xbf16>
    %cst_15 = arith.constant dense<0.000000e+00> : vector<8x128xf32>
    %12 = tpu.matmul %9, %11, %cst_15 {dimension_numbers = #tpu.dot_dimension_numbers<[1], [0], [0], [1], [0, 0, 1, 1], [], []>} : vector<8x128xbf16>, vector<128x128xbf16>, vector<8x128xf32> -> vector<8x128xf32>
    %13 = arith.addf %7, %12 : vector<8x128xf32>
    %c0_16 = arith.constant 0 : index
    %c0_17 = arith.constant 0 : index
    %c2 = arith.constant 2 : index
    %c0_18 = arith.constant 0 : index
    %14 = vector.load %arg4[%c0_16, %c0_17, %c2, %c0_18] : memref<1x1x10x128xbf16, #tpu.memory_space<vmem>>, vector<1x1x8x128xbf16>
    %15 = vector.shape_cast %14 : vector<1x1x8x128xbf16> to vector<8x128xbf16>
    %c0_19 = arith.constant 0 : index
    %c2_20 = arith.constant 2 : index
    %c0_21 = arith.constant 0 : index
    %c0_22 = arith.constant 0 : index
    %16 = vector.load %arg5[%c0_19, %c2_20, %c0_21, %c0_22] : memref<1x3x128x128xbf16, #tpu.memory_space<vmem>>, vector<1x1x128x128xbf16>
    %17 = vector.shape_cast %16 : vector<1x1x128x128xbf16> to vector<128x128xbf16>
    %cst_23 = arith.constant dense<0.000000e+00> : vector<8x128xf32>
    %18 = tpu.matmul %15, %17, %cst_23 {dimension_numbers = #tpu.dot_dimension_numbers<[1], [0], [0], [1], [0, 0, 1, 1], [], []>} : vector<8x128xbf16>, vector<128x128xbf16>, vector<8x128xf32> -> vector<8x128xf32>
    %19 = arith.addf %13, %18 : vector<8x128xf32>
    %c0_24 = arith.constant 0 : index
    %c0_25 = arith.constant 0 : index
    %20 = vector.load %arg9[%c0_24, %c0_25] : memref<8x128xf32, #tpu.memory_space<vmem>>, vector<8x128xf32>
    %21 = arith.addf %20, %19 : vector<8x128xf32>
    %c0_26 = arith.constant 0 : index
    %c0_27 = arith.constant 0 : index
    %22 = vector.load %arg9[%c0_26, %c0_27] : memref<8x128xf32, #tpu.memory_space<vmem>>, vector<8x128xf32>
    tpu.vector_store %arg9[%c0_26, %c0_27], %21 {strides = array<i32>} : memref<8x128xf32, #tpu.memory_space<vmem>>, vector<8x128xf32>,
    %c2_i32 = arith.constant 2 : i32
    %23 = arith.cmpi eq, %arg3, %c2_i32 : i32
    %24 = arith.extui %23 : i1 to i32
    %c0_i32_28 = arith.constant 0 : i32
    %25 = arith.cmpi ne, %24, %c0_i32_28 : i32
    scf.if %25 {
      %c0_29 = arith.constant 0 : index
      %c0_30 = arith.constant 0 : index
      %26 = vector.load %arg9[%c0_29, %c0_30] : memref<8x128xf32, #tpu.memory_space<vmem>>, vector<8x128xf32>
      %c0_31 = arith.constant 0 : index
      %c0_32 = arith.constant 0 : index
      %27 = vector.load %arg6[%c0_31, %c0_32] : memref<1x128xf32, #tpu.memory_space<vmem>>, vector<1x128xf32>
      %28 = vector.broadcast %27 : vector<1x128xf32> to vector<8x128xf32>
      %29 = arith.addf %26, %28 : vector<8x128xf32>
      %c0_33 = arith.constant 0 : index
      %c0_34 = arith.constant 0 : index
      %c0_35 = arith.constant 0 : index
      %c0_36 = arith.constant 0 : index
      %30 = vector.load %arg7[%c0_33, %c0_34, %c0_35, %c0_36] : memref<1x1x8x128xbf16, #tpu.memory_space<vmem>>, vector<1x1x8x128xbf16>
      %31 = vector.shape_cast %30 : vector<1x1x8x128xbf16> to vector<8x128xbf16>
      %32 = arith.extf %31 : vector<8x128xbf16> to vector<8x128xf32>
      %33 = arith.addf %29, %32 : vector<8x128xf32>
      %cst_37 = arith.constant 0.000000e+00 : f32
      %34 = vector.broadcast %cst_37 : f32 to vector<8x128xf32>
      %35 = arith.maximumf %33, %34 : vector<8x128xf32>
      %36 = arith.truncf %35 : vector<8x128xf32> to vector<8x128xbf16>
      %c0_38 = arith.constant 0 : index
      %c0_39 = arith.constant 0 : index
      %c0_40 = arith.constant 0 : index
      %c0_41 = arith.constant 0 : index
      %37 = vector.load %arg8[%c0_38, %c0_39, %c0_40, %c0_41] : memref<1x1x8x128xbf16, #tpu.memory_space<vmem>>, vector<1x1x8x128xbf16>
      %38 = vector.shape_cast %37 : vector<1x1x8x128xbf16> to vector<8x128xbf16>
      %39 = vector.shape_cast %36 : vector<8x128xbf16> to vector<1x1x8x128xbf16>
      tpu.vector_store %arg8[%c0_38, %c0_39, %c0_40, %c0_41], %39 {strides = array<i32>} : memref<1x1x8x128xbf16, #tpu.memory_space<vmem>>, vector<1x1x8x128xbf16>,
    } else {
    }
    return
  }
  func.func @transform_0(%arg0: i32, %arg1: i32, %arg2: i32, %arg3: i32) -> (i32, i32, i32, i32) {
    %c1_i32 = arith.constant 1 : i32
    %0 = arith.muli %arg1, %c1_i32 : i32
    %1 = arith.addi %0, %arg3 : i32
    %c0_i32 = arith.constant 0 : i32
    %c0_i32_0 = arith.constant 0 : i32
    %c0_i32_1 = arith.constant 0 : i32
    return %arg0, %1, %c0_i32, %c0_i32_0 : i32, i32, i32, i32
  }
  func.func @transform_1(%arg0: i32, %arg1: i32, %arg2: i32, %arg3: i32) -> (i32, i32, i32, i32) {
    %c0_i32 = arith.constant 0 : i32
    %c0_i32_0 = arith.constant 0 : i32
    %c0_i32_1 = arith.constant 0 : i32
    return %arg3, %c0_i32, %c0_i32_0, %arg2 : i32, i32, i32, i32
  }
  func.func @transform_2(%arg0: i32, %arg1: i32, %arg2: i32, %arg3: i32) -> (i32, i32) {
    %c0_i32 = arith.constant 0 : i32
    %c0_i32_0 = arith.constant 0 : i32
    return %c0_i32, %arg2 : i32, i32
  }
  func.func @transform_3(%arg0: i32, %arg1: i32, %arg2: i32, %arg3: i32) -> (i32, i32, i32, i32) {
    %c0_i32 = arith.constant 0 : i32
    %c0_i32_0 = arith.constant 0 : i32
    return %arg0, %arg1, %c0_i32, %arg2 : i32, i32, i32, i32
  }
  func.func @transform_4(%arg0: i32, %arg1: i32, %arg2: i32, %arg3: i32) -> (i32, i32, i32, i32) {
    %c0_i32 = arith.constant 0 : i32
    %c0_i32_0 = arith.constant 0 : i32
    return %arg0, %arg1, %c0_i32, %arg2 : i32, i32, i32, i32
  }
}

</mosaic_0001>

<bundles_post_ra>
// kernel: run.5
= control target key start
LH: loop header
LB: loop body
LE: loop exit
PB: predicated region body
PF: predicated region fallthrough
CT: control target
= control target key end

     0   :  { %s1046_s12 = smov 0   ;;  %s1048_s13 = smov 0   ;;  %s1168_s0 = inlined_call_operand.vmem [shape: bf16[2,18,18,128], index: 0, kind: input, shape index: {}]   ;;  %s1169_s1 = inlined_call_operand.vmem [shape: bf16[3,3,128,128], index: 1, kind: input, shape index: {}]   ;;  %s1170_s2 = inlined_call_operand.vmem [shape: f32[1,128], index: 2, kind: input, shape index: {}]   ;;  %s1171_s3 = inlined_call_operand.vmem [shape: bf16[2,16,16,128], index: 3, kind: output, shape index: {}]  }
   0x1   :  { %s1050_s14 = smov 0   ;;  %s1052_s15 = smov 0  }
   0x2   :  { %s1054_s16 = smov 0   ;;  %s1056_s17 = smov 0  }
   0x3   :  { %s1058_s18 = smov 0  }
   0x4 LB: > { %s28_s19 = sadd.s32 1, %s1011_s15  ;;  %s35_s20 = sadd.s32 1, %s1015_s16  ;;  %s1023_s18 = sphi %s1058_s18, %s13_s18   ;;  %s1019_s17 = sphi %s1056_s17, %s1177_s17   ;;  %s1015_s16 = sphi %s1054_s16, %s1176_s16   ;;  %s1011_s15 = sphi %s1052_s15, %s1175_s15   ;;  %s1007_s14 = sphi %s1050_s14, %s1174_s14   ;;  %s1003_s13 = sphi %s1048_s13, %s1173_s13   ;;  %s999_s12 = sphi %s1046_s12, %s1172_s12  }
   0x5   : > { %p29_p0 = scmp.ge.s32.totalorder %s28_s19, 3  ;;  %p734_p1 = scmp.ge.s32.totalorder %s1023_s18, 1 }
   0x6   : > { %p200_p2 = scmp.lt.s32.totalorder %s1023_s18, 97  ;;  %s39_s21 = sadd.s32 1, %s1019_s17 }
   0x7   : > { %s1179_s19 = smov (%p29_p0, %s28_s19), 0  ;;  %s1181_s20 = smov (!%p29_p0, %s35_s20), %s1015_s16 }
   0x8   : > { %p201_p3 = pnand %p734_p1, %p200_p2  ;;  %p37_p4 = scmp.ge.s32.totalorder %s1181_s20, 16 }
   0x9   : > { %s247_s22 = sadd.s32 (!%p201_p3), %s999_s12, %s1003_s13  ;;  %p248_p6 = scmp.lt.s32.totalorder (!%p201_p3), %s1007_s14, 1 }
   0xa   : > { %s1183_s20 = smov (%p37_p4, %s1181_s20), 0  ;;  %s1185_s21 = smov (!%p37_p4, %s39_s21), %s1019_s17 }
   0xb   : > { %p41_p5 = scmp.ge.s32.totalorder %s1185_s21, 2  ;;  %204 = sbr.rel (%p201_p3) target bundleno = 225 (0xe1), region = 32 }
   0xc   : > { %p250_p7 = scmp.lt.s32.totalorder (!%p201_p3), %s247_s22, 17  ;;  %p258_p8 = scmp.lt.s32.totalorder (!%p201_p3), %s999_s12, 2 }
   0xd   : > { %s1187_s21 = smov (%p41_p5, %s1185_s21), 0  ;;  %p271_p9 = scmp.lt.s32.totalorder (!%p201_p3), %s1003_s13, 15 }
   0xe   : > { %p740_p10 = scmp.ne.s32.totalorder (!%p201_p3), %s999_s12, 0 }
  0x10   : > { %s1189_s14 = smov (!%p248_p6, %s1007_s14), 1  ;;  %s1191_s22 = smov (!%p250_p7, %s247_s22), 17 }
  0x11   : > { %s909_s23 = smul.u32 54, %s1189_s14  ;;  %s738_s8 = sshll.u32 %s1189_s14, 5 }
  0x12   : > { %s908_s24 = smul.u32 3, %s1191_s22  ;;  %s1193_s13 = smov (!%p271_p9, %s1003_s13), 15 }
  0x13   : > { %s259_s25 = scalar_select %p258_p8, %s999_s12, 2 }
  0x14   : > { %s254_s26 = sadd.s32 %s909_s23, %s908_s24  ;;  %s737_s9 = sshll.u32 %s1193_s13, 1 }
  0x15   : > { %s735_s27 = sshll.u32 %s254_s26, 2  ;;  %s910_s28 = smul.u32 192, %s259_s25 }
  0x16   : > { %s1100_s4 = scalar_lea.vmem %s1168_s0, %s735_s27  ;;  %s278_s10 = sadd.s32 %s738_s8, %s737_s9 }
  0x17   : > { %s1105_s7 = scalar_lea.vmem %s1169_s1, %s910_s28  ;;  %s739_s11 = sshll.u32 %s278_s10, 2 }
  0x18   : > { %s1111_s24 = scalar_lea.vmem %s1171_s3, %s739_s11  ;;  %284 = sbr.rel (%p740_p10) target bundleno = 32 (0x20), region = 36 }
  0x1d   : > { %v1025_v0 = vmov 0.0  }
  0x1e   : > { %285 = vst [vmem:[#allocation2] sm:$0xff] %v1025_v0 }
  0x1f   : > { %286 = vst [vmem:[#allocation2 + $0x8] sm:$0xff] %v1025_v0 }
  0x20 PF: > { %v887_v1 = vld [vmem:[%s1105_s7 + $0x78] sm:$0xff]  ;;  %v886_v4 = vld [vmem:[%s1105_s7 + $0x70] sm:$0xff]  ;;  %v885_v7 = vld [vmem:[%s1105_s7 + $0x68] sm:$0xff]  ;;  %vm331_vm0 = vsmask.f32 7424  ;;  %vm491_vm1 = vcmask 1046528  }
  0x21   : > { %v879_v2 = vld [vmem:[%s1105_s7 + $0x38] sm:$0xff]  ;;  %393 = vmatpush.bf16.msra.mxu0 %v887_v1  ;;  %v878_v5 = vld [vmem:[%s1105_s7 + $0x30] sm:$0xff]  ;;  %v877_v8 = vld [vmem:[%s1105_s7 + $0x28] sm:$0xff]  ;;  %p869_p11 = scmp.ne.s32.totalorder %s999_s12, 2 }
  0x22   : > { %v895_v3 = vld [vmem:[%s1105_s7 + $0xb8] sm:$0xff]  ;;  %456 = vmatpush.bf16.msra.mxu1 %v879_v2  ;;  %v894_v6 = vld [vmem:[%s1105_s7 + $0xb0] sm:$0xff]  ;;  %v893_v9 = vld [vmem:[%s1105_s7 + $0xa8] sm:$0xff] }
  0x23   : > { %544 = vmatpush.bf16.msra.mxu2 %v895_v3  ;;  %v884_v10 = vld [vmem:[%s1105_s7 + $0x60] sm:$0xff]  ;;  %v305_v13 = vld [vmem:[%s1100_s4 + $0x8] sm:$0x1]  ;;  %v883_v14 = vld [vmem:[%s1105_s7 + $0x58] sm:$0xff] }
  0x24   : > { %v876_v11 = vld [vmem:[%s1105_s7 + $0x20] sm:$0xff]  ;;  %v875_v15 = vld [vmem:[%s1105_s7 + $0x18] sm:$0xff]  ;;  %v328_v16 = vunpack.c.l.b16 %v305_v13  ;;  %v882_v19 = vld [vmem:[%s1105_s7 + $0x50] sm:$0xff] }
  0x25   : > { %394 = vmatpush.bf16.msra.mxu0 %v886_v4  ;;  %v892_v12 = vld [vmem:[%s1105_s7 + $0xa0] sm:$0xff]  ;;  %v891_v17 = vld [vmem:[%s1105_s7 + $0x98] sm:$0xff]  ;;  %v874_v20 = vld [vmem:[%s1105_s7 + $0x10] sm:$0xff] }
  0x26   : > { %457 = vmatpush.bf16.msra.mxu1 %v878_v5  ;;  %v897_v18 = vld [vmem:[%s1100_s4] sm:$0xff]   ;;  %v330_v21 = vpack.c.b16 %v328_v16, %v328_v16  ;;  %v890_v23 = vld [vmem:[%s1105_s7 + $0x90] sm:$0xff]  ;;  %v881_v26 = vld [vmem:[%s1105_s7 + $0x48] sm:$0xff] }
  0x27   : > { %545 = vmatpush.bf16.msra.mxu2 %v894_v6  ;;  %v335_v22 = vshll.u32 %v897_v18, 16  ;;  %v905_v24 = vld [vmem:[%s1100_s4] sm:$0xf0]  ;;  %v906_v25 = vld [vmem:[%s1100_s4] sm:$0xe]  ;;  %v873_v27 = vld [vmem:[%s1105_s7 + $0x8] sm:$0xff] }
  0x28   : > { %v333_v28 = vshrl.u32 %v897_v18, 16  ;;  %v340_v30 = vshll.u32 %v330_v21, 16  ;;  %v889_v31 = vld [vmem:[%s1105_s7 + $0x88] sm:$0xff]  ;;  %v907_v32 = vor.u32 %v906_v25, %v905_v24  ;;  %v880_v33 = vld [vmem:[%s1105_s7 + $0x40] sm:$0xff]  ;;  %v493_v39 = vrot.slane %v330_v21, 1 }
  0x29   : > { %395 = vmatpush.bf16.msra.mxu0 %v885_v7  ;;  %v337_v29 = vrot.slane %v335_v22, 1  ;;  %v872_v34 = vld [vmem:[%s1105_s7] sm:$0xff]  ;;  %v561_v53 = vld [vmem:[#allocation2 + $0x8] sm:$0xff] }
  0x2a   : > { %458 = vmatpush.bf16.msra.mxu1 %v877_v8  ;;  %v342_v36 = vrot.slane %v340_v30, 1  ;;  %v888_v37 = vld [vmem:[%s1105_s7 + $0x80] sm:$0xff]  ;;  %v492_v38 = vrot.slane %v907_v32, 1 }
  0x2b   : > { %546 = vmatpush.bf16.msra.mxu2 %v893_v9  ;;  %v338_v35 = vor.u32 %v337_v29, %v333_v28  ;;  %v560_v46 = vld [vmem:[#allocation2] sm:$0xff] }
  0x2c   : > { %v494_v41 = vsel %vm491_vm1, %v492_v38, %v493_v39 }
  0x2d   : > { %396 = vmatpush.bf16.msra.mxu0 %v884_v10  ;;  %v343_v40 = vsel %vm331_vm0, %v338_v35, %v342_v36 }
  0x2e   : > { %459 = vmatpush.bf16.msra.mxu1 %v876_v11 }
  0x2f   : > { %547 = vmatpush.bf16.msra.mxu2 %v892_v12 }
  0x31   : > { %397 = vmatpush.bf16.msra.mxu0 %v883_v14 }
  0x32   : > { %460 = vmatpush.bf16.msra.mxu1 %v875_v15 }
  0x33   : > { %548 = vmatpush.bf16.msra.mxu2 %v891_v17 }
  0x35   : > { %398 = vmatpush.bf16.msra.mxu0 %v882_v19 }
  0x36   : > { %461 = vmatpush.bf16.msra.mxu1 %v874_v20 }
  0x37   : > { %549 = vmatpush.bf16.msra.mxu2 %v890_v23 }
  0x39   : > { %399 = vmatpush.bf16.msra.mxu0 %v881_v26 }
  0x3a   : > { %462 = vmatpush.bf16.msra.mxu1 %v873_v27 }
  0x3b   : > { %550 = vmatpush.bf16.msra.mxu2 %v889_v31 }
  0x3d   : > { %400 = vmatpush.bf16.msra.mxu0 %v880_v33 }
  0x3e   : > { %463 = vmatpush.bf16.msra.mxu1 %v872_v34 }
  0x3f   : > { %551 = vmatpush.bf16.msra.mxu2 %v888_v37 }
  0x40   : > { %401 = vmatmul.bf16.vlgmr.msra.gmra.mxu0 %v343_v40 }
  0x41   : > { %464 = vmatmul.bf16.vlgmr.msra.gmra.mxu1 %v897_v18 }
  0x42   : > { %552 = vmatmul.bf16.vlgmr.msra.gmra.mxu2 %v494_v41 }
  0xbd   : > { %v402_v42 = vpop.f32.mrf.mxu0 }
  0xbe   : > { %v465_v43 = vpop.f32.mrf.mxu1 }
  0xbf   : > { %v466_v44 = vadd.f32 %v465_v43, %v402_v42 }
  0xc5   : > { %v553_v45 = vpop.f32.mrf.mxu2  ;;  %v404_v49 = vpop.f32.mrf.mxu0 }
  0xc6   : > { %v558_v47 = vadd.f32 %v553_v45, %v466_v44  ;;  %v467_v50 = vpop.f32.mrf.mxu1 }
  0xc7   : > { %v468_v51 = vadd.f32 %v467_v50, %v404_v49 }
  0xc8   : > { %v562_v48 = vadd.f32 %v560_v46, %v558_v47 }
  0xca   : > { %564 = vst [vmem:[#allocation2] sm:$0xff] %v562_v48 }
  0xcd   : > { %v555_v52 = vpop.f32.mrf.mxu2 }
  0xce   : > { %v559_v54 = vadd.f32 %v555_v52, %v468_v51  ;;  %569 = sbr.rel (%p869_p11) target bundleno = 225 (0xe1), region = 40 }
  0xd0   : > { %v563_v55 = vadd.f32 %v561_v53, %v559_v54 }
  0xd2   : > { %565 = vst [vmem:[#allocation2 + $0x8] sm:$0xff] %v563_v55 }
  0xd3   : > { %v570_v56 = vld [vmem:[#allocation2] sm:$0xff] }
  0xd4   : > { %v968_v58 = vld [vmem:[%s1170_s2] ss:$0 sm:$0xff] }
  0xd5   : > { %v576_v59 = vadd.f32 %v968_v58, %v570_v56 }
  0xd7   : > { %v578_v61 = vmax.f32 %v576_v59, 0.0 }
  0xd9   : > { %v571_v57 = vld [vmem:[#allocation2 + $0x8] sm:$0xff] }
  0xda   : > { %v577_v60 = vadd.f32 %v968_v58, %v571_v57 }
  0xdc   : > { %v579_v62 = vmax.f32 %v577_v60, 0.0 }
  0xde   : > { %v903_v63 = vpack.c.bf16 %v579_v62, %v578_v61 }
  0xe0   : > { %904 = vst [vmem:[%s1111_s24] sm:$0xff] %v903_v63  }
  0xe1 PF: > { %s13_s18 = sadd.s32 1, %s1023_s18   ;;  %s1172_s12 = smov %s1011_s15 }
  0xe2   : > { %p10_p12 = scmp.ge.s32.totalorder %s13_s18, 98   ;;  %s1173_s13 = smov %s1015_s16 }
  0xe3   : > { %s1174_s14 = smov %s1019_s17  ;;  %s1175_s15 = smov %s1179_s19 }
  0xe4   : > { %s1176_s16 = smov %s1183_s20  ;;  %s1177_s17 = smov %s1187_s21 }
  0xe5   :  { %12 = sbr.rel (!%p10_p12) target bundleno = 4 (0x4), region = 78 }

// kernel: run.6
= control target key start
LH: loop header
LB: loop body
LE: loop exit
PB: predicated region body
PF: predicated region fallthrough
CT: control target
= control target key end

     0   :  { %s1160_s15 = smov 0   ;;  %s1162_s16 = smov 0   ;;  %s1288_s0 = inlined_call_operand.vmem [shape: bf16[2,18,18,128], index: 0, kind: input, shape index: {}]   ;;  %s1289_s1 = inlined_call_operand.vmem [shape: bf16[3,3,128,128], index: 1, kind: input, shape index: {}]   ;;  %s1290_s2 = inlined_call_operand.vmem [shape: f32[1,128], index: 2, kind: input, shape index: {}]   ;;  %s1291_s3 = inlined_call_operand.vmem [shape: bf16[2,16,16,128], index: 3, kind: input, shape index: {}]   ;;  %s1292_s4 = inlined_call_operand.vmem [shape: bf16[2,16,16,128], index: 4, kind: output, shape index: {}]  }
   0x1   :  { %s1164_s17 = smov 0   ;;  %s1166_s18 = smov 0  }
   0x2   :  { %s1168_s19 = smov 0   ;;  %s1170_s20 = smov 0  }
   0x3   :  { %s1172_s21 = smov 0  }
   0x4 LB: > { %s29_s22 = sadd.s32 1, %s1120_s18  ;;  %s36_s23 = sadd.s32 1, %s1124_s19  ;;  %s1132_s21 = sphi %s1172_s21, %s14_s21   ;;  %s1128_s20 = sphi %s1170_s20, %s1300_s20   ;;  %s1124_s19 = sphi %s1168_s19, %s1299_s19   ;;  %s1120_s18 = sphi %s1166_s18, %s1298_s18   ;;  %s1116_s17 = sphi %s1164_s17, %s1297_s17   ;;  %s1112_s16 = sphi %s1162_s16, %s1296_s16   ;;  %s1108_s15 = sphi %s1160_s15, %s1295_s15  }
   0x5   : > { %p30_p0 = scmp.ge.s32.totalorder %s29_s22, 3  ;;  %p836_p1 = scmp.ge.s32.totalorder %s1132_s21, 1 }
   0x6   : > { %p246_p2 = scmp.lt.s32.totalorder %s1132_s21, 97  ;;  %s40_s24 = sadd.s32 1, %s1128_s20 }
   0x7   : > { %s1302_s22 = smov (%p30_p0, %s29_s22), 0  ;;  %s1304_s23 = smov (!%p30_p0, %s36_s23), %s1124_s19 }
   0x8   : > { %p247_p3 = pnand %p836_p1, %p246_p2  ;;  %p38_p4 = scmp.ge.s32.totalorder %s1304_s23, 16 }
   0x9   : > { %s307_s25 = sadd.s32 (!%p247_p3), %s1108_s15, %s1112_s16  ;;  %p308_p6 = scmp.lt.s32.totalorder (!%p247_p3), %s1116_s17, 1 }
   0xa   : > { %s1306_s23 = smov (%p38_p4, %s1304_s23), 0  ;;  %s1308_s24 = smov (!%p38_p4, %s40_s24), %s1128_s20 }
   0xb   : > { %p42_p5 = scmp.ge.s32.totalorder %s1308_s24, 2  ;;  %250 = sbr.rel (%p247_p3) target bundleno = 228 (0xe4), region = 36 }
   0xc   : > { %p310_p7 = scmp.lt.s32.totalorder (!%p247_p3), %s307_s25, 17  ;;  %p318_p8 = scmp.lt.s32.totalorder (!%p247_p3), %s1108_s15, 2 }
   0xd   : > { %s1310_s24 = smov (%p42_p5, %s1308_s24), 0  ;;  %p331_p9 = scmp.lt.s32.totalorder (!%p247_p3), %s1112_s16, 15 }
   0xe   : > { %1293 = sst [smem:[#allocation3_spill]] %s1310_s24  ;;  %p845_p10 = scmp.ne.s32.totalorder (!%p247_p3), %s1108_s15, 0 }
  0x10   : > { %s1312_s17 = smov (!%p308_p6, %s1116_s17), 1  ;;  %s1314_s25 = smov (!%p310_p7, %s307_s25), 17 }
  0x11   : > { %s1018_s26 = smul.u32 54, %s1312_s17  ;;  %s840_s12 = sshll.u32 %s1312_s17, 5 }
  0x12   : > { %s1017_s27 = smul.u32 3, %s1314_s25  ;;  %s1316_s16 = smov (!%p331_p9, %s1112_s16), 15 }
  0x13   : > { %s319_s28 = scalar_select %p318_p8, %s1108_s15, 2 }
  0x14   : > { %s314_s29 = sadd.s32 %s1018_s26, %s1017_s27  ;;  %s839_s13 = sshll.u32 %s1316_s16, 1 }
  0x15   : > { %s837_s30 = sshll.u32 %s314_s29, 2  ;;  %s1019_s5 = smul.u32 192, %s319_s28 }
  0x16   : > { %s1214_s8 = scalar_lea.vmem %s1288_s0, %s837_s30  ;;  %s338_s14 = sadd.s32 %s840_s12, %s839_s13 }
  0x17   : > { %s1219_s11 = scalar_lea.vmem %s1289_s1, %s1019_s5  ;;  %s841_s25 = sshll.u32 %s338_s14, 2 }
  0x18   : > { %s1225_s27 = scalar_lea.vmem %s1291_s3, %s841_s25  ;;  %s1230_s30 = scalar_lea.vmem %s1292_s4, %s841_s25 }
  0x19   : > { %356 = sbr.rel (%p845_p10) target bundleno = 33 (0x21), region = 40 }
  0x1e   : > { %v1134_v0 = vmov 0.0  }
  0x1f   : > { %357 = vst [vmem:[#allocation2] sm:$0xff] %v1134_v0 }
  0x20   : > { %358 = vst [vmem:[#allocation2 + $0x8] sm:$0xff] %v1134_v0 }
  0x21 PF: > { %v992_v1 = vld [vmem:[%s1219_s11 + $0x78] sm:$0xff]  ;;  %v991_v4 = vld [vmem:[%s1219_s11 + $0x70] sm:$0xff]  ;;  %v990_v7 = vld [vmem:[%s1219_s11 + $0x68] sm:$0xff]  ;;  %vm403_vm0 = vsmask.f32 7424  ;;  %vm563_vm1 = vcmask 1046528  }
  0x22   : > { %v984_v2 = vld [vmem:[%s1219_s11 + $0x38] sm:$0xff]  ;;  %465 = vmatpush.bf16.msra.mxu0 %v992_v1  ;;  %v983_v5 = vld [vmem:[%s1219_s11 + $0x30] sm:$0xff]  ;;  %v982_v8 = vld [vmem:[%s1219_s11 + $0x28] sm:$0xff]  ;;  %p974_p11 = scmp.ne.s32.totalorder %s1108_s15, 2 }
  0x23   : > { %v1000_v3 = vld [vmem:[%s1219_s11 + $0xb8] sm:$0xff]  ;;  %528 = vmatpush.bf16.msra.mxu1 %v984_v2  ;;  %v999_v6 = vld [vmem:[%s1219_s11 + $0xb0] sm:$0xff]  ;;  %v998_v9 = vld [vmem:[%s1219_s11 + $0xa8] sm:$0xff] }
  0x24   : > { %616 = vmatpush.bf16.msra.mxu2 %v1000_v3  ;;  %v989_v10 = vld [vmem:[%s1219_s11 + $0x60] sm:$0xff]  ;;  %v377_v13 = vld [vmem:[%s1214_s8 + $0x8] sm:$0x1]  ;;  %v988_v14 = vld [vmem:[%s1219_s11 + $0x58] sm:$0xff] }
  0x25   : > { %v981_v11 = vld [vmem:[%s1219_s11 + $0x20] sm:$0xff]  ;;  %v980_v15 = vld [vmem:[%s1219_s11 + $0x18] sm:$0xff]  ;;  %v400_v16 = vunpack.c.l.b16 %v377_v13  ;;  %v987_v19 = vld [vmem:[%s1219_s11 + $0x50] sm:$0xff] }
  0x26   : > { %466 = vmatpush.bf16.msra.mxu0 %v991_v4  ;;  %v997_v12 = vld [vmem:[%s1219_s11 + $0xa0] sm:$0xff]  ;;  %v996_v17 = vld [vmem:[%s1219_s11 + $0x98] sm:$0xff]  ;;  %v979_v20 = vld [vmem:[%s1219_s11 + $0x10] sm:$0xff] }
  0x27   : > { %529 = vmatpush.bf16.msra.mxu1 %v983_v5  ;;  %v1002_v18 = vld [vmem:[%s1214_s8] sm:$0xff]   ;;  %v402_v21 = vpack.c.b16 %v400_v16, %v400_v16  ;;  %v995_v23 = vld [vmem:[%s1219_s11 + $0x90] sm:$0xff]  ;;  %v986_v26 = vld [vmem:[%s1219_s11 + $0x48] sm:$0xff] }
  0x28   : > { %617 = vmatpush.bf16.msra.mxu2 %v999_v6  ;;  %v407_v22 = vshll.u32 %v1002_v18, 16  ;;  %v1014_v24 = vld [vmem:[%s1214_s8] sm:$0xf0]  ;;  %v1015_v25 = vld [vmem:[%s1214_s8] sm:$0xe]  ;;  %v978_v27 = vld [vmem:[%s1219_s11 + $0x8] sm:$0xff] }
  0x29   : > { %v405_v28 = vshrl.u32 %v1002_v18, 16  ;;  %v412_v30 = vshll.u32 %v402_v21, 16  ;;  %v994_v31 = vld [vmem:[%s1219_s11 + $0x88] sm:$0xff]  ;;  %v1016_v32 = vor.u32 %v1015_v25, %v1014_v24  ;;  %v985_v33 = vld [vmem:[%s1219_s11 + $0x40] sm:$0xff]  ;;  %v565_v39 = vrot.slane %v402_v21, 1 }
  0x2a   : > { %467 = vmatpush.bf16.msra.mxu0 %v990_v7  ;;  %v409_v29 = vrot.slane %v407_v22, 1  ;;  %v977_v34 = vld [vmem:[%s1219_s11] sm:$0xff]  ;;  %v633_v53 = vld [vmem:[#allocation2 + $0x8] sm:$0xff] }
  0x2b   : > { %530 = vmatpush.bf16.msra.mxu1 %v982_v8  ;;  %v414_v36 = vrot.slane %v412_v30, 1  ;;  %v993_v37 = vld [vmem:[%s1219_s11 + $0x80] sm:$0xff]  ;;  %v564_v38 = vrot.slane %v1016_v32, 1 }
  0x2c   : > { %618 = vmatpush.bf16.msra.mxu2 %v998_v9  ;;  %v410_v35 = vor.u32 %v409_v29, %v405_v28  ;;  %v632_v46 = vld [vmem:[#allocation2] sm:$0xff] }
  0x2d   : > { %v566_v41 = vsel %vm563_vm1, %v564_v38, %v565_v39 }
  0x2e   : > { %468 = vmatpush.bf16.msra.mxu0 %v989_v10  ;;  %v415_v40 = vsel %vm403_vm0, %v410_v35, %v414_v36 }
  0x2f   : > { %531 = vmatpush.bf16.msra.mxu1 %v981_v11 }
  0x30   : > { %619 = vmatpush.bf16.msra.mxu2 %v997_v12 }
  0x32   : > { %469 = vmatpush.bf16.msra.mxu0 %v988_v14 }
  0x33   : > { %532 = vmatpush.bf16.msra.mxu1 %v980_v15 }
  0x34   : > { %620 = vmatpush.bf16.msra.mxu2 %v996_v17 }
  0x36   : > { %470 = vmatpush.bf16.msra.mxu0 %v987_v19 }
  0x37   : > { %533 = vmatpush.bf16.msra.mxu1 %v979_v20 }
  0x38   : > { %621 = vmatpush.bf16.msra.mxu2 %v995_v23 }
  0x3a   : > { %471 = vmatpush.bf16.msra.mxu0 %v986_v26 }
  0x3b   : > { %534 = vmatpush.bf16.msra.mxu1 %v978_v27 }
  0x3c   : > { %622 = vmatpush.bf16.msra.mxu2 %v994_v31 }
  0x3e   : > { %472 = vmatpush.bf16.msra.mxu0 %v985_v33 }
  0x3f   : > { %535 = vmatpush.bf16.msra.mxu1 %v977_v34 }
  0x40   : > { %623 = vmatpush.bf16.msra.mxu2 %v993_v37 }
  0x41   : > { %473 = vmatmul.bf16.vlgmr.msra.gmra.mxu0 %v415_v40 }
  0x42   : > { %536 = vmatmul.bf16.vlgmr.msra.gmra.mxu1 %v1002_v18 }
  0x43   : > { %624 = vmatmul.bf16.vlgmr.msra.gmra.mxu2 %v566_v41 }
  0xbe   : > { %v474_v42 = vpop.f32.mrf.mxu0 }
  0xbf   : > { %v537_v43 = vpop.f32.mrf.mxu1 }
  0xc0   : > { %v538_v44 = vadd.f32 %v537_v43, %v474_v42 }
  0xc6   : > { %v625_v45 = vpop.f32.mrf.mxu2  ;;  %v476_v49 = vpop.f32.mrf.mxu0 }
  0xc7   : > { %v630_v47 = vadd.f32 %v625_v45, %v538_v44  ;;  %v539_v50 = vpop.f32.mrf.mxu1 }
  0xc8   : > { %v540_v51 = vadd.f32 %v539_v50, %v476_v49 }
  0xc9   : > { %v634_v48 = vadd.f32 %v632_v46, %v630_v47 }
  0xcb   : > { %636 = vst [vmem:[#allocation2] sm:$0xff] %v634_v48 }
  0xce   : > { %v627_v52 = vpop.f32.mrf.mxu2 }
  0xcf   : > { %v631_v54 = vadd.f32 %v627_v52, %v540_v51  ;;  %641 = sbr.rel (%p974_p11) target bundleno = 228 (0xe4), region = 44 }
  0xd1   : > { %v635_v55 = vadd.f32 %v633_v53, %v631_v54 }
  0xd3   : > { %637 = vst [vmem:[#allocation2 + $0x8] sm:$0xff] %v635_v55 }
  0xd4   : > { %v642_v56 = vld [vmem:[#allocation2] sm:$0xff] }
  0xd5   : > { %v1077_v58 = vld [vmem:[%s1290_s2] ss:$0 sm:$0xff] }
  0xd6   : > { %v1006_v59 = vld [vmem:[%s1225_s27] sm:$0xff]   ;;  %v648_v62 = vadd.f32 %v1077_v58, %v642_v56 }
  0xd7   : > { %v1007_v60 = vunpack.c.l.bf16 %v1006_v59  ;;  %v1008_v61 = vunpack.c.h.bf16 %v1006_v59 }
  0xd9   : > { %v654_v0 = vadd.f32 %v1007_v60, %v648_v62 }
  0xda   : > { %v643_v57 = vld [vmem:[#allocation2 + $0x8] sm:$0xff] }
  0xdb   : > { %v649_v63 = vadd.f32 %v1077_v58, %v643_v57  ;;  %v656_v2 = vmax.f32 %v654_v0, 0.0 }
  0xdd   : > { %v655_v1 = vadd.f32 %v1008_v61, %v649_v63 }
  0xdf   : > { %v657_v3 = vmax.f32 %v655_v1, 0.0 }
  0xe1   : > { %v1012_v4 = vpack.c.bf16 %v657_v3, %v656_v2 }
  0xe3   : > { %1013 = vst [vmem:[%s1230_s30] sm:$0xff] %v1012_v4  }
  0xe4 PF: > { %s14_s21 = sadd.s32 1, %s1132_s21   ;;  %s1294_s24 = sld [smem:[#allocation3_spill]] }
  0xe5   : > { %p11_p12 = scmp.ge.s32.totalorder %s14_s21, 98   ;;  %s1295_s15 = smov %s1120_s18 }
  0xe6   : > { %s1296_s16 = smov %s1124_s19  ;;  %s1297_s17 = smov %s1128_s20 }
  0xe7   : > { %s1298_s18 = smov %s1302_s22  ;;  %s1299_s19 = smov %s1306_s23 }
  0xe8   :  { %13 = sbr.rel (!%p11_p12) target bundleno = 4 (0x4), region = 85 }
  0xea   : > { %s1300_s20 = smov %s1294_s24 }

// kernel: run.7
= control target key start
LH: loop header
LB: loop body
LE: loop exit
PB: predicated region body
PF: predicated region fallthrough
CT: control target
= control target key end

     0   :  { %s1028_s12 = smov 0   ;;  %s1030_s13 = smov 0   ;;  %s1151_s0 = inlined_call_operand.vmem [shape: bf16[2,18,18,128], index: 0, kind: input, shape index: {}]   ;;  %s1152_s1 = inlined_call_operand.vmem [shape: bf16[3,3,128,128], index: 1, kind: input, shape index: {}]   ;;  %s1153_s2 = inlined_call_operand.vmem [shape: f32[1,128], index: 2, kind: input, shape index: {}]   ;;  %s1154_s3 = inlined_call_operand.vmem [shape: bf16[2,8,8,128], index: 3, kind: output, shape index: {}]  }
   0x1   :  { %s1032_s14 = smov 0   ;;  %s1034_s15 = smov 0  }
   0x2   :  { %s1036_s16 = smov 0   ;;  %s1038_s17 = smov 0  }
   0x3   :  { %s1040_s18 = smov 0  }
   0x4 LB: > { %s28_s19 = sadd.s32 1, %s993_s15  ;;  %s35_s20 = sadd.s32 1, %s997_s16  ;;  %s1005_s18 = sphi %s1040_s18, %s13_s18   ;;  %s1001_s17 = sphi %s1038_s17, %s1160_s17   ;;  %s997_s16 = sphi %s1036_s16, %s1159_s16   ;;  %s993_s15 = sphi %s1034_s15, %s1158_s15   ;;  %s989_s14 = sphi %s1032_s14, %s1157_s14   ;;  %s985_s13 = sphi %s1030_s13, %s1156_s13   ;;  %s981_s12 = sphi %s1028_s12, %s1155_s12  }
   0x5   : > { %p29_p0 = scmp.ge.s32.totalorder %s28_s19, 3  ;;  %p718_p1 = scmp.ge.s32.totalorder %s1005_s18, 1 }
   0x6   : > { %p204_p2 = scmp.lt.s32.totalorder %s1005_s18, 49  ;;  %s39_s21 = sadd.s32 1, %s1001_s17 }
   0x7   : > { %s1162_s19 = smov (%p29_p0, %s28_s19), 0  ;;  %s1164_s20 = smov (!%p29_p0, %s35_s20), %s997_s16 }
   0x8   : > { %p205_p3 = pnand %p718_p1, %p204_p2  ;;  %p37_p4 = scmp.ge.s32.totalorder %s1164_s20, 8 }
   0x9   : > { %s719_s22 = sshll.u32 (!%p205_p3), %s985_s13, 1  ;;  %p253_p6 = scmp.lt.s32.totalorder (!%p205_p3), %s989_s14, 1 }
   0xa   : > { %s1166_s20 = smov (%p37_p4, %s1164_s20), 0  ;;  %s1168_s21 = smov (!%p37_p4, %s39_s21), %s1001_s17 }
   0xb   : > { %p41_p5 = scmp.ge.s32.totalorder %s1168_s21, 2  ;;  %208 = sbr.rel (%p205_p3) target bundleno = 216 (0xd8), region = 32 }
   0xc   : > { %s252_s23 = sadd.s32 (!%p205_p3), %s981_s12, %s719_s22  ;;  %p264_p7 = scmp.lt.s32.totalorder (!%p205_p3), %s981_s12, 2 }
   0xd   : > { %s1170_s21 = smov (%p41_p5, %s1168_s21), 0  ;;  %p255_p8 = scmp.lt.s32.totalorder (!%p205_p3), %s252_s23, 17 }
   0xe   : > { %p277_p9 = scmp.lt.s32.totalorder (!%p205_p3), %s985_s13, 7  ;;  %p724_p10 = scmp.ne.s32.totalorder (!%p205_p3), %s981_s12, 0 }
  0x10   : > { %s1172_s14 = smov (!%p253_p6, %s989_s14), 1  ;;  %s1174_s23 = smov (!%p255_p8, %s252_s23), 17 }
  0x11   : > { %s891_s24 = smul.u32 54, %s1172_s14  ;;  %s722_s9 = sshll.u32 %s1172_s14, 3 }
  0x12   : > { %s265_s25 = scalar_select %p264_p7, %s981_s12, 2 }
  0x13   : > { %s890_s26 = smul.u32 3, %s1174_s23  ;;  %s1176_s13 = smov (!%p277_p9, %s985_s13), 7 }
  0x14   : > { %s892_s27 = smul.u32 192, %s265_s25  ;;  %s283_s10 = sadd.s32 %s722_s9, %s1176_s13 }
  0x15   : > { %s259_s28 = sadd.s32 %s891_s24, %s890_s26  ;;  %s723_s11 = sshll.u32 %s283_s10, 2 }
  0x16   : > { %s720_s29 = sshll.u32 %s259_s28, 2  ;;  %s1082_s5 = scalar_lea.vmem %s1152_s1, %s892_s27 }
  0x17   : > { %s1087_s8 = scalar_lea.vmem %s1151_s0, %s720_s29  ;;  %s1093_s25 = scalar_lea.vmem %s1154_s3, %s723_s11 }
  0x18   : > { %289 = sbr.rel (%p724_p10) target bundleno = 31 (0x1f), region = 36 }
  0x1d   : > { %v1007_v0 = vmov 0.0  }
  0x1e   : > { %290 = vst [vmem:[#allocation2] sm:$0xff] %v1007_v0 }
  0x1f PF: > { %v880_v1 = vld [vmem:[%s1082_s5 + $0x78] sm:$0xff]  ;;  %v879_v4 = vld [vmem:[%s1082_s5 + $0x70] sm:$0xff]  ;;  %v878_v7 = vld [vmem:[%s1082_s5 + $0x68] sm:$0xff]  ;;  %p861_p11 = scmp.ne.s32.totalorder %s981_s12, 2 }
  0x20   : > { %v871_v2 = vld [vmem:[%s1082_s5 + $0x38] sm:$0xff]  ;;  %388 = vmatpush.bf16.msra.mxu0 %v880_v1  ;;  %v870_v5 = vld [vmem:[%s1082_s5 + $0x30] sm:$0xff]  ;;  %v869_v8 = vld [vmem:[%s1082_s5 + $0x28] sm:$0xff] }
  0x21   : > { %v889_v3 = vld [vmem:[%s1082_s5 + $0xb8] sm:$0xff]  ;;  %449 = vmatpush.bf16.msra.mxu1 %v871_v2  ;;  %v888_v6 = vld [vmem:[%s1082_s5 + $0xb0] sm:$0xff]  ;;  %v887_v9 = vld [vmem:[%s1082_s5 + $0xa8] sm:$0xff] }
  0x22   : > { %542 = vmatpush.bf16.msra.mxu2 %v889_v3  ;;  %v877_v10 = vld [vmem:[%s1082_s5 + $0x60] sm:$0xff]  ;;  %v876_v13 = vld [vmem:[%s1082_s5 + $0x58] sm:$0xff]  ;;  %v872_v16 = vld [vmem:[%s1087_s8 + $0x4] sm:$0x10] }
  0x23   : > { %v868_v11 = vld [vmem:[%s1082_s5 + $0x20] sm:$0xff]  ;;  %v867_v14 = vld [vmem:[%s1082_s5 + $0x18] sm:$0xff]  ;;  %v875_v21 = vld [vmem:[%s1082_s5 + $0x50] sm:$0xff] }
  0x24   : > { %389 = vmatpush.bf16.msra.mxu0 %v879_v4  ;;  %v886_v12 = vld [vmem:[%s1082_s5 + $0xa0] sm:$0xff]  ;;  %v885_v17 = vld [vmem:[%s1082_s5 + $0x98] sm:$0xff]  ;;  %v866_v22 = vld [vmem:[%s1082_s5 + $0x10] sm:$0xff] }
  0x25   : > { %450 = vmatpush.bf16.msra.mxu1 %v870_v5  ;;  %v743_v15 = vld [vmem:[%s1087_s8 + $0x4] sm:$0xf]  ;;  %v827_v18 = vld [vmem:[%s1087_s8] sm:$0xf]  ;;  %v884_v24 = vld [vmem:[%s1082_s5 + $0x90] sm:$0xff] }
  0x26   : > { %543 = vmatpush.bf16.msra.mxu2 %v888_v6  ;;  %v881_v19 = vld [vmem:[%s1087_s8] sm:$0x10]  ;;  %v744_v20 = vor.u32 %v872_v16, %v743_v15  ;;  %v874_v26 = vld [vmem:[%s1082_s5 + $0x48] sm:$0xff]  ;;  %v291_v38 = vld [vmem:[%s1087_s8] sm:$0xf] }
  0x27   : > { %v828_v23 = vor.u32 %v881_v19, %v827_v18  ;;  %v865_v27 = vld [vmem:[%s1082_s5 + $0x8] sm:$0xff]  ;;  %v873_v32 = vld [vmem:[%s1082_s5 + $0x40] sm:$0xff] }
  0x28   : > { %390 = vmatpush.bf16.msra.mxu0 %v878_v7  ;;  %v335_v25 = vshll.u32 %v744_v20, 16  ;;  %v883_v29 = vld [vmem:[%s1082_s5 + $0x88] sm:$0xff]  ;;  %v333_v30 = vshrl.u32 %v744_v20, 16  ;;  %v864_v33 = vld [vmem:[%s1082_s5] sm:$0xff] }
  0x29   : > { %451 = vmatpush.bf16.msra.mxu1 %v869_v8  ;;  %v489_v28 = vshll.u32 %v828_v23, 16  ;;  %v487_v34 = vshrl.u32 %v828_v23, 16  ;;  %v882_v36 = vld [vmem:[%s1082_s5 + $0x80] sm:$0xff] }
  0x2a   : > { %544 = vmatpush.bf16.msra.mxu2 %v887_v9  ;;  %v337_v31 = vrot.slane %v335_v25, 1  ;;  %v556_v44 = vld [vmem:[#allocation2] sm:$0xff] }
  0x2b   : > { %v491_v35 = vrot.slane %v489_v28, 1 }
  0x2c   : > { %391 = vmatpush.bf16.msra.mxu0 %v877_v10  ;;  %v338_v37 = vor.u32 %v337_v31, %v333_v30 }
  0x2d   : > { %452 = vmatpush.bf16.msra.mxu1 %v868_v11  ;;  %v492_v39 = vor.u32 %v491_v35, %v487_v34 }
  0x2e   : > { %545 = vmatpush.bf16.msra.mxu2 %v886_v12 }
  0x30   : > { %392 = vmatpush.bf16.msra.mxu0 %v876_v13 }
  0x31   : > { %453 = vmatpush.bf16.msra.mxu1 %v867_v14 }
  0x32   : > { %546 = vmatpush.bf16.msra.mxu2 %v885_v17 }
  0x34   : > { %393 = vmatpush.bf16.msra.mxu0 %v875_v21 }
  0x35   : > { %454 = vmatpush.bf16.msra.mxu1 %v866_v22 }
  0x36   : > { %547 = vmatpush.bf16.msra.mxu2 %v884_v24 }
  0x38   : > { %394 = vmatpush.bf16.msra.mxu0 %v874_v26 }
  0x39   : > { %455 = vmatpush.bf16.msra.mxu1 %v865_v27 }
  0x3a   : > { %548 = vmatpush.bf16.msra.mxu2 %v883_v29 }
  0x3c   : > { %395 = vmatpush.bf16.msra.mxu0 %v873_v32 }
  0x3d   : > { %456 = vmatpush.bf16.msra.mxu1 %v864_v33 }
  0x3e   : > { %549 = vmatpush.bf16.msra.mxu2 %v882_v36 }
  0x3f   : > { %396 = vmatmul.bf16.vlgmr.msra.gmra.mxu0 %v338_v37 }
  0x40   : > { %457 = vmatmul.bf16.vlgmr.msra.gmra.mxu1 %v291_v38 }
  0x41   : > { %550 = vmatmul.bf16.vlgmr.msra.gmra.mxu2 %v492_v39 }
  0xbc   : > { %v397_v40 = vpop.f32.mrf.mxu0 }
  0xbd   : > { %v458_v41 = vpop.f32.mrf.mxu1 }
  0xbe   : > { %v459_v42 = vadd.f32 %v458_v41, %v397_v40 }
  0xc4   : > { %v551_v43 = vpop.f32.mrf.mxu2  ;;  %v399_v46 = vpop.f32.mrf.mxu0 }
  0xc5   : > { %v555_v45 = vadd.f32 %v551_v43, %v459_v42  ;;  %v460_v47 = vpop.f32.mrf.mxu1 }
  0xc7   : > { %v557_v48 = vadd.f32 %v556_v44, %v555_v45 }
  0xc8   : > { %562 = sbr.rel (%p861_p11) target bundleno = 216 (0xd8), region = 40 }
  0xc9   : > { %558 = vst [vmem:[#allocation2] sm:$0xff] %v557_v48 }
  0xcc   : > { %v553_v49 = vpop.f32.mrf.mxu2 }
  0xcd   : > { %v950_v51 = vld [vmem:[%s1153_s2] ss:$0 sm:$0xff] }
  0xd0   : > { %v563_v50 = vld [vmem:[#allocation2] sm:$0xff] }
  0xd1   : > { %v568_v52 = vadd.f32 %v950_v51, %v563_v50 }
  0xd3   : > { %v569_v53 = vmax.f32 %v568_v52, 0.0 }
  0xd5   : > { %v570_v54 = vpack.c.bf16 %v569_v53, %v569_v53 }
  0xd7   : > { %571 = vst [vmem:[%s1093_s25] sm:$0xf] %v570_v54 }
  0xd8 PF: > { %s13_s18 = sadd.s32 1, %s1005_s18   ;;  %s1155_s12 = smov %s993_s15 }
  0xd9   : > { %p10_p12 = scmp.ge.s32.totalorder %s13_s18, 50   ;;  %s1156_s13 = smov %s997_s16 }
  0xda   : > { %s1157_s14 = smov %s1001_s17  ;;  %s1158_s15 = smov %s1162_s19 }
  0xdb   : > { %s1159_s16 = smov %s1166_s20  ;;  %s1160_s17 = smov %s1170_s21 }
  0xdc   :  { %12 = sbr.rel (!%p10_p12) target bundleno = 4 (0x4), region = 78 }

// kernel: run.8
= control target key start
LH: loop header
LB: loop body
LE: loop exit
PB: predicated region body
PF: predicated region fallthrough
CT: control target
= control target key end

     0   :  { %s680_s12 = smov 0   ;;  %s682_s13 = smov 0   ;;  %s763_s0 = inlined_call_operand.vmem [shape: bf16[2,16,16,128], index: 0, kind: input, shape index: {}]   ;;  %s764_s1 = inlined_call_operand.vmem [shape: bf16[1,1,128,128], index: 1, kind: input, shape index: {}]   ;;  %s765_s2 = inlined_call_operand.vmem [shape: f32[1,128], index: 2, kind: input, shape index: {}]   ;;  %s766_s3 = inlined_call_operand.vmem [shape: bf16[2,8,8,128], index: 3, kind: output, shape index: {}]  }
   0x1   :  { %s684_s14 = smov 0   ;;  %s686_s15 = smov 0  }
   0x2   :  { %s688_s16 = smov 0  }
   0x3 LB: > { %s35_s17 = sadd.s32 1, %s650_s14  ;;  %s39_s18 = sadd.s32 1, %s654_s15  ;;  %s658_s16 = sphi %s688_s16, %s13_s16   ;;  %s654_s15 = sphi %s686_s15, %s770_s15   ;;  %s650_s14 = sphi %s684_s14, %s769_s14   ;;  %s646_s13 = sphi %s682_s13, %s768_s13   ;;  %s642_s12 = sphi %s680_s12, %s767_s12  }
   0x4   : > { %p37_p0 = scmp.ge.s32.totalorder %s35_s17, 8  ;;  %p530_p1 = scmp.ge.s32.totalorder %s658_s16, 1 }
   0x5   : > { %p204_p2 = scmp.lt.s32.totalorder %s658_s16, 17 }
   0x6   : > { %s772_s17 = smov (%p37_p0, %s35_s17), 0  ;;  %s774_s18 = smov (!%p37_p0, %s39_s18), %s654_s15 }
   0x7   : > { %p205_p3 = pnand %p530_p1, %p204_p2  ;;  %p41_p4 = scmp.ge.s32.totalorder %s774_s18, 2 }
   0x8   : > { %s531_s25 = sshll.u32 (!%p205_p3), %s642_s12, 1  ;;  %p253_p5 = scmp.lt.s32.totalorder (!%p205_p3), %s646_s13, 1 }
   0x9   : > { %s776_s18 = smov (%p41_p4, %s774_s18), 0  ;;  %208 = sbr.rel (%p205_p3) target bundleno = 180 (0xb4), region = 32 }
   0xa   : > { %p255_p6 = scmp.lt.s32.totalorder (!%p205_p3), %s531_s25, 15  ;;  %p277_p7 = scmp.lt.s32.totalorder (!%p205_p3), %s642_s12, 7 }
   0xe   : > { %v578_v0 = vld [vmem:[%s764_s1 + $0x38] sm:$0xff]  ;;  %v577_v1 = vld [vmem:[%s764_s1 + $0x30] sm:$0xff]  ;;  %v576_v2 = vld [vmem:[%s764_s1 + $0x28] sm:$0xff]  ;;  %s778_s13 = smov (!%p253_p5, %s646_s13), 1  ;;  %s780_s25 = smov (!%p255_p6, %s531_s25), 15 }
   0xf   : > { %356 = vmatpush.bf16.msra.mxu0 %v578_v0  ;;  %v575_v3 = vld [vmem:[%s764_s1 + $0x20] sm:$0xff]  ;;  %v574_v4 = vld [vmem:[%s764_s1 + $0x18] sm:$0xff]  ;;  %v573_v5 = vld [vmem:[%s764_s1 + $0x10] sm:$0xff]  ;;  %s532_s5 = sshll.u32 %s780_s25, 1  ;;  %s533_s6 = sshll.u32 %s778_s13, 5 }
  0x10   : > { %s259_s7 = sadd.s32 %s533_s6, %s532_s5  ;;  %v572_v6 = vld [vmem:[%s764_s1 + $0x8] sm:$0xff]  ;;  %v571_v7 = vld [vmem:[%s764_s1] sm:$0xff]  ;;  %s782_s12 = smov (!%p277_p7, %s642_s12), 7 }
  0x11   : > { %s534_s10 = sshll.u32 %s259_s7, 2  ;;  %s535_s23 = sshll.u32 %s778_s13, 3  ;;  %v619_v9 = vld [vmem:[%s765_s2] ss:$0 sm:$0xff] }
  0x12   : > { %s261_s22 = scalar_lea.vmem %s763_s0, %s534_s10  ;;  %s283_s24 = sadd.s32 %s535_s23, %s782_s12 }
  0x13   : > { %357 = vmatpush.bf16.msra.mxu0 %v577_v1  ;;  %v291_v8 = vld [vmem:[%s261_s22] sm:$0xf]  ;;  %s536_s27 = sshll.u32 %s283_s24, 2 }
  0x14   : > { %s285_s30 = scalar_lea.vmem %s766_s3, %s536_s27 }
  0x17   : > { %358 = vmatpush.bf16.msra.mxu0 %v576_v2 }
  0x1b   : > { %359 = vmatpush.bf16.msra.mxu0 %v575_v3 }
  0x1f   : > { %360 = vmatpush.bf16.msra.mxu0 %v574_v4 }
  0x23   : > { %361 = vmatpush.bf16.msra.mxu0 %v573_v5 }
  0x27   : > { %362 = vmatpush.bf16.msra.mxu0 %v572_v6 }
  0x2b   : > { %363 = vmatpush.bf16.msra.mxu0 %v571_v7 }
  0x2e   : > { %364 = vmatmul.bf16.vlgmr.msra.gmra.mxu0 %v291_v8 }
  0xab   : > { %v365_v10 = vpop.f32.mrf.mxu0 }
  0xac   : > { %v380_v11 = vadd.f32 %v619_v9, %v365_v10 }
  0xae   : > { %v381_v12 = vpack.c.bf16 %v380_v11, %v380_v11 }
  0xb0   : > { %382 = vst [vmem:[%s285_s30] sm:$0xf] %v381_v12 }
  0xb3   : > { %v367_v13 = vpop.f32.mrf.mxu0 }
  0xb4 PF: > { %s13_s16 = sadd.s32 1, %s658_s16   ;;  %s767_s12 = smov %s650_s14 }
  0xb5   : > { %p10_p8 = scmp.ge.s32.totalorder %s13_s16, 18   ;;  %s768_s13 = smov %s654_s15 }
  0xb6   : > { %s769_s14 = smov %s772_s17  ;;  %s770_s15 = smov %s776_s18 }
  0xb7   :  { %12 = sbr.rel (!%p10_p8) target bundleno = 3 (0x3), region = 76 }

// kernel: run.9
= control target key start
LH: loop header
LB: loop body
LE: loop exit
PB: predicated region body
PF: predicated region fallthrough
CT: control target
= control target key end

     0   :  { %s1098_s15 = smov 0   ;;  %s1100_s16 = smov 0   ;;  %s1225_s0 = inlined_call_operand.vmem [shape: bf16[2,10,10,128], index: 0, kind: input, shape index: {}]   ;;  %s1226_s1 = inlined_call_operand.vmem [shape: bf16[3,3,128,128], index: 1, kind: input, shape index: {}]   ;;  %s1227_s2 = inlined_call_operand.vmem [shape: f32[1,128], index: 2, kind: input, shape index: {}]   ;;  %s1228_s3 = inlined_call_operand.vmem [shape: bf16[2,8,8,128], index: 3, kind: input, shape index: {}]   ;;  %s1229_s4 = inlined_call_operand.vmem [shape: bf16[2,8,8,128], index: 4, kind: output, shape index: {}]  }
   0x1   :  { %s1102_s17 = smov 0   ;;  %s1104_s18 = smov 0  }
   0x2   :  { %s1106_s19 = smov 0   ;;  %s1108_s20 = smov 0  }
   0x3   :  { %s1110_s21 = smov 0  }
   0x4 LB: > { %s29_s22 = sadd.s32 1, %s1058_s18  ;;  %s36_s23 = sadd.s32 1, %s1062_s19  ;;  %s1070_s21 = sphi %s1110_s21, %s14_s21   ;;  %s1066_s20 = sphi %s1108_s20, %s1235_s20   ;;  %s1062_s19 = sphi %s1106_s19, %s1234_s19   ;;  %s1058_s18 = sphi %s1104_s18, %s1233_s18   ;;  %s1054_s17 = sphi %s1102_s17, %s1232_s17   ;;  %s1050_s16 = sphi %s1100_s16, %s1231_s16   ;;  %s1046_s15 = sphi %s1098_s15, %s1230_s15  }
   0x5   : > { %p30_p0 = scmp.ge.s32.totalorder %s29_s22, 3  ;;  %p792_p1 = scmp.ge.s32.totalorder %s1070_s21, 1 }
   0x6   : > { %p245_p2 = scmp.lt.s32.totalorder %s1070_s21, 49  ;;  %s40_s24 = sadd.s32 1, %s1066_s20 }
   0x7   : > { %s1237_s22 = smov (%p30_p0, %s29_s22), 0  ;;  %s1239_s23 = smov (!%p30_p0, %s36_s23), %s1062_s19 }
   0x8   : > { %p246_p3 = pnand %p792_p1, %p245_p2  ;;  %p38_p4 = scmp.ge.s32.totalorder %s1239_s23, 8 }
   0x9   : > { %s304_s25 = sadd.s32 (!%p246_p3), %s1046_s15, %s1050_s16  ;;  %p305_p6 = scmp.lt.s32.totalorder (!%p246_p3), %s1054_s17, 1 }
   0xa   : > { %s1241_s23 = smov (%p38_p4, %s1239_s23), 0  ;;  %s1243_s24 = smov (!%p38_p4, %s40_s24), %s1066_s20 }
   0xb   : > { %p42_p5 = scmp.ge.s32.totalorder %s1243_s24, 2  ;;  %249 = sbr.rel (%p246_p3) target bundleno = 217 (0xd9), region = 36 }
   0xc   : > { %p307_p7 = scmp.lt.s32.totalorder (!%p246_p3), %s304_s25, 9  ;;  %p315_p8 = scmp.lt.s32.totalorder (!%p246_p3), %s1046_s15, 2 }
   0xd   : > { %s1245_s24 = smov (%p42_p5, %s1243_s24), 0  ;;  %p328_p9 = scmp.lt.s32.totalorder (!%p246_p3), %s1050_s16, 7 }
   0xe   : > { %p800_p10 = scmp.ne.s32.totalorder (!%p246_p3), %s1046_s15, 0 }
  0x10   : > { %s1247_s17 = smov (!%p305_p6, %s1054_s17), 1  ;;  %s1249_s25 = smov (!%p307_p7, %s304_s25), 9 }
  0x11   : > { %s956_s26 = smul.u32 20, %s1247_s17  ;;  %s793_s27 = sshll.u32 %s1249_s25, 1 }
  0x12   : > { %s796_s7 = sshll.u32 %s1247_s17, 3  ;;  %s1251_s16 = smov (!%p328_p9, %s1050_s16), 7 }
  0x13   : > { %s311_s28 = sadd.s32 %s956_s26, %s793_s27  ;;  %s334_s10 = sadd.s32 %s796_s7, %s1251_s16 }
  0x14   : > { %s794_s29 = sshll.u32 %s311_s28, 2  ;;  %s797_s14 = sshll.u32 %s334_s10, 2 }
  0x15   : > { %s1151_s6 = scalar_lea.vmem %s1225_s0, %s794_s29  ;;  %s1163_s27 = scalar_lea.vmem %s1228_s3, %s797_s14 }
  0x16   : > { %s316_s8 = scalar_select %p315_p8, %s1046_s15, 2 }
  0x17   : > { %s1168_s29 = scalar_lea.vmem %s1229_s4, %s797_s14  ;;  %351 = sbr.rel (%p800_p10) target bundleno = 30 (0x1e), region = 40 }
  0x18   : > { %s957_s9 = smul.u32 192, %s316_s8 }
  0x1a   : > { %s1158_s13 = scalar_lea.vmem %s1226_s1, %s957_s9 }
  0x1c   : > { %v1072_v0 = vmov 0.0  }
  0x1d   : > { %352 = vst [vmem:[#allocation2] sm:$0xff] %v1072_v0 }
  0x1e PF: > { %v947_v1 = vld [vmem:[%s1158_s13 + $0x78] sm:$0xff]  ;;  %v946_v4 = vld [vmem:[%s1158_s13 + $0x70] sm:$0xff]  ;;  %v945_v7 = vld [vmem:[%s1158_s13 + $0x68] sm:$0xff]  ;;  %p929_p11 = scmp.ne.s32.totalorder %s1046_s15, 2 }
  0x1f   : > { %v939_v2 = vld [vmem:[%s1158_s13 + $0x38] sm:$0xff]  ;;  %449 = vmatpush.bf16.msra.mxu0 %v947_v1  ;;  %v938_v5 = vld [vmem:[%s1158_s13 + $0x30] sm:$0xff]  ;;  %v937_v8 = vld [vmem:[%s1158_s13 + $0x28] sm:$0xff] }
  0x20   : > { %v955_v3 = vld [vmem:[%s1158_s13 + $0xb8] sm:$0xff]  ;;  %510 = vmatpush.bf16.msra.mxu1 %v939_v2  ;;  %v954_v6 = vld [vmem:[%s1158_s13 + $0xb0] sm:$0xff]  ;;  %v953_v9 = vld [vmem:[%s1158_s13 + $0xa8] sm:$0xff] }
  0x21   : > { %594 = vmatpush.bf16.msra.mxu2 %v955_v3  ;;  %v944_v10 = vld [vmem:[%s1158_s13 + $0x60] sm:$0xff]  ;;  %v943_v17 = vld [vmem:[%s1158_s13 + $0x58] sm:$0xff]  ;;  %v942_v21 = vld [vmem:[%s1158_s13 + $0x50] sm:$0xff] }
  0x22   : > { %v936_v11 = vld [vmem:[%s1158_s13 + $0x20] sm:$0xff]  ;;  %v935_v18 = vld [vmem:[%s1158_s13 + $0x18] sm:$0xff]  ;;  %v934_v22 = vld [vmem:[%s1158_s13 + $0x10] sm:$0xff] }
  0x23   : > { %450 = vmatpush.bf16.msra.mxu0 %v946_v4  ;;  %v353_v12 = vld [vmem:[%s1151_s6] sm:$0xf]  ;;  %v370_v13 = vld [vmem:[%s1151_s6 + $0x4] sm:$0x1]  ;;  %v951_v19 = vld [vmem:[%s1158_s13 + $0x98] sm:$0xff] }
  0x24   : > { %511 = vmatpush.bf16.msra.mxu1 %v938_v5  ;;  %v952_v14 = vld [vmem:[%s1158_s13 + $0xa0] sm:$0xff]  ;;  %v390_v15 = vunpack.c.l.b16 %v353_v12  ;;  %v391_v16 = vunpack.c.l.b16 %v370_v13  ;;  %v950_v23 = vld [vmem:[%s1158_s13 + $0x90] sm:$0xff]  ;;  %v941_v26 = vld [vmem:[%s1158_s13 + $0x48] sm:$0xff] }
  0x25   : > { %595 = vmatpush.bf16.msra.mxu2 %v954_v6  ;;  %v523_v24 = vld [vmem:[%s1151_s6] sm:$0xe]  ;;  %v933_v27 = vld [vmem:[%s1158_s13 + $0x8] sm:$0xff] }
  0x26   : > { %v392_v20 = vpack.c.b16 %v391_v16, %v390_v15  ;;  %v542_v28 = vunpack.c.l.b16 %v523_v24  ;;  %v949_v29 = vld [vmem:[%s1158_s13 + $0x88] sm:$0xff]  ;;  %v940_v32 = vld [vmem:[%s1158_s13 + $0x40] sm:$0xff] }
  0x27   : > { %451 = vmatpush.bf16.msra.mxu0 %v945_v7  ;;  %v932_v33 = vld [vmem:[%s1158_s13] sm:$0xff] }
  0x28   : > { %512 = vmatpush.bf16.msra.mxu1 %v937_v8  ;;  %v396_v25 = vshll.u32 %v392_v20, 16  ;;  %v394_v30 = vshrl.u32 %v392_v20, 16  ;;  %v543_v34 = vpack.c.b16 %v391_v16, %v542_v28  ;;  %v948_v35 = vld [vmem:[%s1158_s13 + $0x80] sm:$0xff] }
  0x29   : > { %596 = vmatpush.bf16.msra.mxu2 %v953_v9  ;;  %v608_v42 = vld [vmem:[#allocation2] sm:$0xff] }
  0x2a   : > { %v398_v31 = vrot.slane %v396_v25, 1  ;;  %v544_v37 = vrot.slane %v543_v34, 1 }
  0x2b   : > { %452 = vmatpush.bf16.msra.mxu0 %v944_v10 }
  0x2c   : > { %513 = vmatpush.bf16.msra.mxu1 %v936_v11  ;;  %v399_v36 = vor.u32 %v398_v31, %v394_v30 }
  0x2d   : > { %597 = vmatpush.bf16.msra.mxu2 %v952_v14 }
  0x2f   : > { %453 = vmatpush.bf16.msra.mxu0 %v943_v17 }
  0x30   : > { %514 = vmatpush.bf16.msra.mxu1 %v935_v18 }
  0x31   : > { %598 = vmatpush.bf16.msra.mxu2 %v951_v19 }
  0x33   : > { %454 = vmatpush.bf16.msra.mxu0 %v942_v21 }
  0x34   : > { %515 = vmatpush.bf16.msra.mxu1 %v934_v22 }
  0x35   : > { %599 = vmatpush.bf16.msra.mxu2 %v950_v23 }
  0x37   : > { %455 = vmatpush.bf16.msra.mxu0 %v941_v26 }
  0x38   : > { %516 = vmatpush.bf16.msra.mxu1 %v933_v27 }
  0x39   : > { %600 = vmatpush.bf16.msra.mxu2 %v949_v29 }
  0x3b   : > { %456 = vmatpush.bf16.msra.mxu0 %v940_v32 }
  0x3c   : > { %517 = vmatpush.bf16.msra.mxu1 %v932_v33 }
  0x3d   : > { %601 = vmatpush.bf16.msra.mxu2 %v948_v35 }
  0x3e   : > { %457 = vmatmul.bf16.vlgmr.msra.gmra.mxu0 %v399_v36 }
  0x3f   : > { %518 = vmatmul.bf16.vlgmr.msra.gmra.mxu1 %v353_v12 }
  0x40   : > { %602 = vmatmul.bf16.vlgmr.msra.gmra.mxu2 %v544_v37 }
  0xbb   : > { %v458_v38 = vpop.f32.mrf.mxu0 }
  0xbc   : > { %v519_v39 = vpop.f32.mrf.mxu1 }
  0xbd   : > { %v520_v40 = vadd.f32 %v519_v39, %v458_v38 }
  0xc3   : > { %v603_v41 = vpop.f32.mrf.mxu2  ;;  %v460_v44 = vpop.f32.mrf.mxu0 }
  0xc4   : > { %v607_v43 = vadd.f32 %v603_v41, %v520_v40  ;;  %v521_v45 = vpop.f32.mrf.mxu1 }
  0xc6   : > { %v609_v46 = vadd.f32 %v608_v42, %v607_v43 }
  0xc7   : > { %614 = sbr.rel (%p929_p11) target bundleno = 217 (0xd9), region = 44 }
  0xc8   : > { %610 = vst [vmem:[#allocation2] sm:$0xff] %v609_v46 }
  0xcb   : > { %v605_v47 = vpop.f32.mrf.mxu2 }
  0xcc   : > { %v1015_v49 = vld [vmem:[%s1227_s2] ss:$0 sm:$0xff] }
  0xcd   : > { %v621_v50 = vld [vmem:[%s1163_s27] sm:$0xf] }
  0xce   : > { %v622_v52 = vunpack.c.l.bf16 %v621_v50 }
  0xcf   : > { %v615_v48 = vld [vmem:[#allocation2] sm:$0xff] }
  0xd0   : > { %v620_v51 = vadd.f32 %v1015_v49, %v615_v48 }
  0xd2   : > { %v623_v53 = vadd.f32 %v622_v52, %v620_v51 }
  0xd4   : > { %v624_v54 = vmax.f32 %v623_v53, 0.0 }
  0xd6   : > { %v625_v55 = vpack.c.bf16 %v624_v54, %v624_v54 }
  0xd8   : > { %626 = vst [vmem:[%s1168_s29] sm:$0xf] %v625_v55 }
  0xd9 PF: > { %s14_s21 = sadd.s32 1, %s1070_s21   ;;  %s1230_s15 = smov %s1058_s18 }
  0xda   : > { %p11_p12 = scmp.ge.s32.totalorder %s14_s21, 50   ;;  %s1231_s16 = smov %s1062_s19 }
  0xdb   : > { %s1232_s17 = smov %s1066_s20  ;;  %s1233_s18 = smov %s1237_s22 }
  0xdc   : > { %s1234_s19 = smov %s1241_s23  ;;  %s1235_s20 = smov %s1245_s24 }
  0xdd   :  { %13 = sbr.rel (!%p11_p12) target bundleno = 4 (0x4), region = 85 }

</bundles_post_ra>
